<compile_context>
chip_gen: v7x
topology: tpu7x:2x2x1
jax: 0.10.0
libtpu: 0.0.40
codegen_flags: <defaults>
</compile_context>

<pallas_src>
import functools

import jax
import jax.numpy as jnp
from jax import lax
from jax.experimental import pallas as pl
from jax.experimental.pallas import tpu as pltpu


def lstm_fc_kernel(x_ref, wih_ref, whh_ref, b_ref, wo_ref, bo_ref,
                   out_ref, gx_ref):
    """LSTM unroll over time + final Linear, fully resident in VMEM.

    x_ref  : (T*BP, IP)   bf16 time-major input, batch/feature zero-padded
    wih_ref: (IP, 4*HP)   bf16 W_ih^T, gate order [i,f,o,g], zero-padded
    whh_ref: (HP, 4*HP)   bf16 W_hh^T, same layout (pad rows/cols are zero)
    b_ref  : (1, 4*HP)    f32  b_ih + b_hh, zero-padded
    wo_ref : (HP, OP)     bf16 fc weight^T, zero-padded
    bo_ref : (1, OP)      f32  fc bias, zero-padded
    out_ref: (BP, OP)     f32  logits for the last timestep's hidden state
    gx_ref : (T*BP, 4*HP) f32  scratch: hoisted input projection (+ bias)
    """
    BP = out_ref.shape[0]
    T = x_ref.shape[0] // BP
    G4 = gx_ref.shape[1]
    HP = G4 // 4

    # (1) Hoist the input projection out of the recurrence: one bf16
    #     (T*BP, IP)x(IP, 4HP) MXU matmul, bias folded in once (f32 accumulate).
    gx_ref[...] = (jnp.dot(x_ref[...], wih_ref[...],
                           preferred_element_type=jnp.float32)
                   + b_ref[...])

    # (2) Serial recurrence; h/c live in f32 vregs (each (BP, HP) = one vreg).
    #     h is cast to bf16 only for the MXU; state/elementwise math stays f32.
    def step(t, carry):
        h, c = carry
        start = pl.multiple_of(t * BP, 8)
        gates = (gx_ref[pl.ds(start, BP), :]
                 + jnp.dot(h.astype(jnp.bfloat16), whh_ref[...],
                           preferred_element_type=jnp.float32))      # (BP, 4HP)
        # gate layout [i | f | o | g]: one sigmoid pass, one tanh pass
        sig = jax.nn.sigmoid(gates[:, : 3 * HP])
        g_g = jnp.tanh(gates[:, 3 * HP:])
        i_g = sig[:, 0 * HP:1 * HP]
        f_g = sig[:, 1 * HP:2 * HP]
        o_g = sig[:, 2 * HP:3 * HP]
        c_new = f_g * c + i_g * g_g
        h_new = o_g * jnp.tanh(c_new)
        return (h_new, c_new)

    h0 = jnp.zeros((BP, HP), jnp.float32)
    c0 = jnp.zeros((BP, HP), jnp.float32)
    h_fin, _ = lax.fori_loop(0, T, step, (h0, c0), unroll=True)

    # (3) fc on the last hidden state (== r_out[:, -1, :] for a 1-layer LSTM).
    out_ref[...] = (jnp.dot(h_fin.astype(jnp.bfloat16), wo_ref[...],
                            preferred_element_type=jnp.float32)
                    + bo_ref[...])


def _round_up(n, m):
    return (n + m - 1) // m * m


def prepack_params(params, *, lane=128):
    """ONE-TIME repack of PyTorch-layout LSTM/Linear params for the kernel.

    Does gate reorder [i,f,g,o]->[i,f,o,g], transposes, zero-pads to lane
    multiples, sums the two biases and casts MXU operands to bf16. Call once
    at setup; do NOT call inside the jitted forward.
    Returns (packed_dict, out_size).
    """
    w_ih, w_hh = params["w_ih"], params["w_hh"]
    b_ih, b_hh = params["b_ih"], params["b_hh"]
    w_out, b_out = params["w_out"], params["b_out"]

    H = w_hh.shape[1]
    I = w_ih.shape[1]
    O = w_out.shape[0]
    HP = _round_up(H, lane)   # each gate gets a full 128-lane group
    OP = _round_up(O, lane)   # unmasked final store
    IP = _round_up(I, lane)   # lane-aligned input projection

    f32 = jnp.float32
    bf16 = jnp.bfloat16

    def reorder(w):           # (4H, ...) grouped by gate: [i,f,g,o] -> [i,f,o,g]
        return jnp.concatenate([w[k * H:(k + 1) * H] for k in (0, 1, 3, 2)],
                               axis=0)

    w_ih_r = reorder(w_ih.astype(f32))                                # (4H, I)
    w_hh_r = reorder(w_hh.astype(f32))                                # (4H, H)
    b_r = reorder((b_ih + b_hh).astype(f32).reshape(4 * H, 1))[:, 0]  # (4H,)

    def pad_gate_cols(wt):    # (rows, 4H) -> (rows, 4HP), per-gate zero pad
        blocks = [jnp.pad(wt[:, k * H:(k + 1) * H], ((0, 0), (0, HP - H)))
                  for k in range(4)]
        return jnp.concatenate(blocks, axis=1)

    wih_p = jnp.pad(pad_gate_cols(w_ih_r.T), ((0, IP - I), (0, 0)))   # (IP, 4HP)
    whh_p = jnp.pad(pad_gate_cols(w_hh_r.T), ((0, HP - H), (0, 0)))   # (HP, 4HP)
    b_p = pad_gate_cols(b_r.reshape(1, 4 * H))                        # (1, 4HP)
    wo_p = jnp.pad(w_out.astype(f32).T, ((0, HP - H), (0, OP - O)))   # (HP, OP)
    bo_p = jnp.pad(b_out.astype(f32).reshape(1, O),
                   ((0, 0), (0, OP - O)))                             # (1, OP)

    packed = {
        "wih": wih_p.astype(bf16),   # MXU operands in bf16
        "whh": whh_p.astype(bf16),
        "wo": wo_p.astype(bf16),
        "b": b_p,                    # biases stay f32 (folded post-accumulate)
        "bo": bo_p,
    }
    packed = jax.device_put(packed)
    return packed, O


@functools.partial(jax.jit, static_argnames=("out_size",))
def rnnmodel_new_forward(x, packed, out_size):
    """x: (B, T, I) float32 (batch_first, like PyTorch). Returns (B, out_size)."""
    wih_p, whh_p, b_p = packed["wih"], packed["whh"], packed["b"]
    wo_p, bo_p = packed["wo"], packed["bo"]

    B, T, I = x.shape
    IP = wih_p.shape[0]
    G4 = wih_p.shape[1]
    OP = wo_p.shape[1]
    BP = _round_up(B, 8)     # full sublane tiles

    # --- time-major, batch- and feature-padded, flattened bf16 input ---------
    x_tm = jnp.transpose(x.astype(jnp.float32), (1, 0, 2))            # (T, B, I)
    x_tm = jnp.pad(x_tm, ((0, 0), (0, BP - B), (0, IP - I)))          # (T, BP, IP)
    x2d = x_tm.reshape(T * BP, IP).astype(jnp.bfloat16)               # (T*BP, IP)

    out_p = pl.pallas_call(
        lstm_fc_kernel,
        out_shape=jax.ShapeDtypeStruct((BP, OP), jnp.float32),
        in_specs=[pl.BlockSpec(memory_space=pltpu.VMEM)] * 6,
        out_specs=pl.BlockSpec(memory_space=pltpu.VMEM),
        scratch_shapes=[pltpu.VMEM((T * BP, G4), jnp.float32)],  # hoisted x-proj
    )(x2d, wih_p, whh_p, b_p, wo_p, bo_p)

    return out_p[:B, :out_size]


def init_params(key, input_size=28, hidden_size=64, out_size=10):
    """Deterministic init matching PyTorch shapes (uniform(-1/sqrt(H), 1/sqrt(H)))."""
    ks = jax.random.split(key, 6)
    bound = 1.0 / jnp.sqrt(hidden_size)
    u = lambda k, shape: jax.random.uniform(k, shape, jnp.float32, -bound, bound)
    return {
        "w_ih": u(ks[0], (4 * hidden_size, input_size)),   # LSTM weight_ih_l0
        "w_hh": u(ks[1], (4 * hidden_size, hidden_size)),  # LSTM weight_hh_l0
        "b_ih": u(ks[2], (4 * hidden_size,)),
        "b_hh": u(ks[3], (4 * hidden_size,)),
        "w_out": u(ks[4], (out_size, hidden_size)),        # Linear(64, 10)
        "b_out": u(ks[5], (out_size,)),
    }


def _reference_forward(x, params):
    """Pure-JAX f32 reference (lax.scan LSTM, PyTorch gate order)."""
    w_ih, w_hh = params["w_ih"], params["w_hh"]
    b = params["b_ih"] + params["b_hh"]
    H = w_hh.shape[1]
    B = x.shape[0]

    def step(carry, x_t):
        h, c = carry
        gates = x_t @ w_ih.T + h @ w_hh.T + b
        i = jax.nn.sigmoid(gates[:, 0 * H:1 * H])
        f = jax.nn.sigmoid(gates[:, 1 * H:2 * H])
        g = jnp.tanh(gates[:, 2 * H:3 * H])
        o = jax.nn.sigmoid(gates[:, 3 * H:4 * H])
        c = f * c + i * g
        h = o * jnp.tanh(c)
        return (h, c), h

    h0 = jnp.zeros((B, H), jnp.float32)
    (hT, _), _ = lax.scan(step, (h0, h0), jnp.transpose(x, (1, 0, 2)))
    return hT @ params["w_out"].T + params["b_out"]


if __name__ == "__main__":
    key = jax.random.PRNGKey(0)
    pkey, xkey = jax.random.split(key)

    B, T, I = 2, 8, 28     # batch=2, seq=8, input_size=28 (as in the module)
    params = init_params(pkey, input_size=I, hidden_size=64, out_size=10)
    x = jax.random.normal(xkey, (B, T, I), dtype=jnp.float32)

    # One-time weight repack (outside the jitted forward).
    packed, out_size = prepack_params(params)

    out = jax.block_until_ready(rnnmodel_new_forward(x, packed, out_size))
    ref = jax.block_until_ready(_reference_forward(x, params))

    assert out.shape == (B, 10)
    # bf16 MXU operands: tolerance relaxed per review (state/elementwise are f32).
    assert jnp.allclose(out, ref, atol=3e-2, rtol=3e-2), (
        f"max abs err = {float(jnp.max(jnp.abs(out - ref)))}")

    print("KERNEL_OK")
</pallas_src>

<mosaic_0001>
module attributes {stable_mosaic.version = 11 : i64} {
  func.func @lstm_fc_kernel(%arg0: memref<64x128xbf16, #tpu.memory_space<vmem>>, %arg1: memref<128x512xbf16, #tpu.memory_space<vmem>>, %arg2: memref<128x512xbf16, #tpu.memory_space<vmem>>, %arg3: memref<1x512xf32, #tpu.memory_space<vmem>>, %arg4: memref<128x128xbf16, #tpu.memory_space<vmem>>, %arg5: memref<1x128xf32, #tpu.memory_space<vmem>>, %arg6: memref<8x128xf32, #tpu.memory_space<vmem>>, %arg7: memref<64x512xf32, #tpu.memory_space<vmem>>) attributes {dimension_semantics = [], scalar_prefetch = 0 : i64, scratch_operands = 1 : i64, tpu.core_type = #tpu.core_type<tc>} {
    %c0 = arith.constant 0 : index
    %c0_0 = arith.constant 0 : index
    %0 = vector.load %arg0[%c0, %c0_0] : memref<64x128xbf16, #tpu.memory_space<vmem>>, vector<64x128xbf16>
    %c0_1 = arith.constant 0 : index
    %c0_2 = arith.constant 0 : index
    %1 = vector.load %arg1[%c0_1, %c0_2] : memref<128x512xbf16, #tpu.memory_space<vmem>>, vector<128x512xbf16>
    %cst = arith.constant dense<0.000000e+00> : vector<64x512xf32>
    %2 = tpu.matmul %0, %1, %cst {dimension_numbers = #tpu.dot_dimension_numbers<[1], [0], [0], [1], [0, 0, 1, 1], [], []>} : vector<64x128xbf16>, vector<128x512xbf16>, vector<64x512xf32> -> vector<64x512xf32>
    %c0_3 = arith.constant 0 : index
    %c0_4 = arith.constant 0 : index
    %3 = vector.load %arg3[%c0_3, %c0_4] : memref<1x512xf32, #tpu.memory_space<vmem>>, vector<1x512xf32>
    %4 = vector.broadcast %3 : vector<1x512xf32> to vector<64x512xf32>
    %5 = arith.addf %2, %4 : vector<64x512xf32>
    %c0_5 = arith.constant 0 : index
    %c0_6 = arith.constant 0 : index
    %6 = vector.load %arg7[%c0_5, %c0_6] : memref<64x512xf32, #tpu.memory_space<vmem>>, vector<64x512xf32>
    tpu.vector_store %arg7[%c0_5, %c0_6], %5 {strides = array<i32>} : memref<64x512xf32, #tpu.memory_space<vmem>>, vector<64x512xf32>,
    %cst_7 = arith.constant 0.000000e+00 : f32
    %7 = vector.broadcast %cst_7 : f32 to vector<8x128xf32>
    %cst_8 = arith.constant 0.000000e+00 : f32
    %8 = vector.broadcast %cst_8 : f32 to vector<8x128xf32>
    %c0_i32 = arith.constant 0 : i32
    %c8_i32 = arith.constant 8 : i32
    %9 = arith.muli %c0_i32, %c8_i32 : i32
    %10 = tpu.assume_multiple %9, 8 : i32
    %11 = arith.index_cast %10 : i32 to index
    %c0_9 = arith.constant 0 : index
    %12 = vector.load %arg7[%11, %c0_9] : memref<64x512xf32, #tpu.memory_space<vmem>>, vector<8x512xf32>
    %13 = arith.truncf %7 : vector<8x128xf32> to vector<8x128xbf16>
    %c0_10 = arith.constant 0 : index
    %c0_11 = arith.constant 0 : index
    %14 = vector.load %arg2[%c0_10, %c0_11] : memref<128x512xbf16, #tpu.memory_space<vmem>>, vector<128x512xbf16>
    %cst_12 = arith.constant dense<0.000000e+00> : vector<8x512xf32>
    %15 = tpu.matmul %13, %14, %cst_12 {dimension_numbers = #tpu.dot_dimension_numbers<[1], [0], [0], [1], [0, 0, 1, 1], [], []>} : vector<8x128xbf16>, vector<128x512xbf16>, vector<8x512xf32> -> vector<8x512xf32>
    %16 = arith.addf %12, %15 : vector<8x512xf32>
    %17 = vector.extract_strided_slice %16 {offsets = [0, 0], sizes = [8, 384], strides = [1, 1]} : vector<8x512xf32> to vector<8x384xf32>
    %18 = arith.negf %17 : vector<8x384xf32>
    %19 = math.exp %18 : vector<8x384xf32>
    %cst_13 = arith.constant 1.000000e+00 : f32
    %20 = vector.broadcast %cst_13 : f32 to vector<8x384xf32>
    %21 = arith.addf %20, %19 : vector<8x384xf32>
    %22 = arith.divf %20, %21 : vector<8x384xf32>
    %23 = vector.extract_strided_slice %16 {offsets = [0, 384], sizes = [8, 128], strides = [1, 1]} : vector<8x512xf32> to vector<8x128xf32>
    %24 = math.tanh %23 : vector<8x128xf32>
    %25 = vector.extract_strided_slice %22 {offsets = [0, 0], sizes = [8, 128], strides = [1, 1]} : vector<8x384xf32> to vector<8x128xf32>
    %26 = vector.extract_strided_slice %22 {offsets = [0, 128], sizes = [8, 128], strides = [1, 1]} : vector<8x384xf32> to vector<8x128xf32>
    %27 = vector.extract_strided_slice %22 {offsets = [0, 256], sizes = [8, 128], strides = [1, 1]} : vector<8x384xf32> to vector<8x128xf32>
    %28 = arith.mulf %26, %8 : vector<8x128xf32>
    %29 = arith.mulf %25, %24 : vector<8x128xf32>
    %30 = arith.addf %28, %29 : vector<8x128xf32>
    %31 = math.tanh %30 : vector<8x128xf32>
    %32 = arith.mulf %27, %31 : vector<8x128xf32>
    %c1_i32 = arith.constant 1 : i32
    %c8_i32_14 = arith.constant 8 : i32
    %33 = arith.muli %c1_i32, %c8_i32_14 : i32
    %34 = tpu.assume_multiple %33, 8 : i32
    %35 = arith.index_cast %34 : i32 to index
    %c0_15 = arith.constant 0 : index
    %36 = vector.load %arg7[%35, %c0_15] : memref<64x512xf32, #tpu.memory_space<vmem>>, vector<8x512xf32>
    %37 = arith.truncf %32 : vector<8x128xf32> to vector<8x128xbf16>
    %c0_16 = arith.constant 0 : index
    %c0_17 = arith.constant 0 : index
    %38 = vector.load %arg2[%c0_16, %c0_17] : memref<128x512xbf16, #tpu.memory_space<vmem>>, vector<128x512xbf16>
    %cst_18 = arith.constant dense<0.000000e+00> : vector<8x512xf32>
    %39 = tpu.matmul %37, %38, %cst_18 {dimension_numbers = #tpu.dot_dimension_numbers<[1], [0], [0], [1], [0, 0, 1, 1], [], []>} : vector<8x128xbf16>, vector<128x512xbf16>, vector<8x512xf32> -> vector<8x512xf32>
    %40 = arith.addf %36, %39 : vector<8x512xf32>
    %41 = vector.extract_strided_slice %40 {offsets = [0, 0], sizes = [8, 384], strides = [1, 1]} : vector<8x512xf32> to vector<8x384xf32>
    %42 = arith.negf %41 : vector<8x384xf32>
    %43 = math.exp %42 : vector<8x384xf32>
    %cst_19 = arith.constant 1.000000e+00 : f32
    %44 = vector.broadcast %cst_19 : f32 to vector<8x384xf32>
    %45 = arith.addf %44, %43 : vector<8x384xf32>
    %46 = arith.divf %44, %45 : vector<8x384xf32>
    %47 = vector.extract_strided_slice %40 {offsets = [0, 384], sizes = [8, 128], strides = [1, 1]} : vector<8x512xf32> to vector<8x128xf32>
    %48 = math.tanh %47 : vector<8x128xf32>
    %49 = vector.extract_strided_slice %46 {offsets = [0, 0], sizes = [8, 128], strides = [1, 1]} : vector<8x384xf32> to vector<8x128xf32>
    %50 = vector.extract_strided_slice %46 {offsets = [0, 128], sizes = [8, 128], strides = [1, 1]} : vector<8x384xf32> to vector<8x128xf32>
    %51 = vector.extract_strided_slice %46 {offsets = [0, 256], sizes = [8, 128], strides = [1, 1]} : vector<8x384xf32> to vector<8x128xf32>
    %52 = arith.mulf %50, %30 : vector<8x128xf32>
    %53 = arith.mulf %49, %48 : vector<8x128xf32>
    %54 = arith.addf %52, %53 : vector<8x128xf32>
    %55 = math.tanh %54 : vector<8x128xf32>
    %56 = arith.mulf %51, %55 : vector<8x128xf32>
    %c2_i32 = arith.constant 2 : i32
    %c8_i32_20 = arith.constant 8 : i32
    %57 = arith.muli %c2_i32, %c8_i32_20 : i32
    %58 = tpu.assume_multiple %57, 8 : i32
    %59 = arith.index_cast %58 : i32 to index
    %c0_21 = arith.constant 0 : index
    %60 = vector.load %arg7[%59, %c0_21] : memref<64x512xf32, #tpu.memory_space<vmem>>, vector<8x512xf32>
    %61 = arith.truncf %56 : vector<8x128xf32> to vector<8x128xbf16>
    %c0_22 = arith.constant 0 : index
    %c0_23 = arith.constant 0 : index
    %62 = vector.load %arg2[%c0_22, %c0_23] : memref<128x512xbf16, #tpu.memory_space<vmem>>, vector<128x512xbf16>
    %cst_24 = arith.constant dense<0.000000e+00> : vector<8x512xf32>
    %63 = tpu.matmul %61, %62, %cst_24 {dimension_numbers = #tpu.dot_dimension_numbers<[1], [0], [0], [1], [0, 0, 1, 1], [], []>} : vector<8x128xbf16>, vector<128x512xbf16>, vector<8x512xf32> -> vector<8x512xf32>
    %64 = arith.addf %60, %63 : vector<8x512xf32>
    %65 = vector.extract_strided_slice %64 {offsets = [0, 0], sizes = [8, 384], strides = [1, 1]} : vector<8x512xf32> to vector<8x384xf32>
    %66 = arith.negf %65 : vector<8x384xf32>
    %67 = math.exp %66 : vector<8x384xf32>
    %cst_25 = arith.constant 1.000000e+00 : f32
    %68 = vector.broadcast %cst_25 : f32 to vector<8x384xf32>
    %69 = arith.addf %68, %67 : vector<8x384xf32>
    %70 = arith.divf %68, %69 : vector<8x384xf32>
    %71 = vector.extract_strided_slice %64 {offsets = [0, 384], sizes = [8, 128], strides = [1, 1]} : vector<8x512xf32> to vector<8x128xf32>
    %72 = math.tanh %71 : vector<8x128xf32>
    %73 = vector.extract_strided_slice %70 {offsets = [0, 0], sizes = [8, 128], strides = [1, 1]} : vector<8x384xf32> to vector<8x128xf32>
    %74 = vector.extract_strided_slice %70 {offsets = [0, 128], sizes = [8, 128], strides = [1, 1]} : vector<8x384xf32> to vector<8x128xf32>
    %75 = vector.extract_strided_slice %70 {offsets = [0, 256], sizes = [8, 128], strides = [1, 1]} : vector<8x384xf32> to vector<8x128xf32>
    %76 = arith.mulf %74, %54 : vector<8x128xf32>
    %77 = arith.mulf %73, %72 : vector<8x128xf32>
    %78 = arith.addf %76, %77 : vector<8x128xf32>
    %79 = math.tanh %78 : vector<8x128xf32>
    %80 = arith.mulf %75, %79 : vector<8x128xf32>
    %c3_i32 = arith.constant 3 : i32
    %c8_i32_26 = arith.constant 8 : i32
    %81 = arith.muli %c3_i32, %c8_i32_26 : i32
    %82 = tpu.assume_multiple %81, 8 : i32
    %83 = arith.index_cast %82 : i32 to index
    %c0_27 = arith.constant 0 : index
    %84 = vector.load %arg7[%83, %c0_27] : memref<64x512xf32, #tpu.memory_space<vmem>>, vector<8x512xf32>
    %85 = arith.truncf %80 : vector<8x128xf32> to vector<8x128xbf16>
    %c0_28 = arith.constant 0 : index
    %c0_29 = arith.constant 0 : index
    %86 = vector.load %arg2[%c0_28, %c0_29] : memref<128x512xbf16, #tpu.memory_space<vmem>>, vector<128x512xbf16>
    %cst_30 = arith.constant dense<0.000000e+00> : vector<8x512xf32>
    %87 = tpu.matmul %85, %86, %cst_30 {dimension_numbers = #tpu.dot_dimension_numbers<[1], [0], [0], [1], [0, 0, 1, 1], [], []>} : vector<8x128xbf16>, vector<128x512xbf16>, vector<8x512xf32> -> vector<8x512xf32>
    %88 = arith.addf %84, %87 : vector<8x512xf32>
    %89 = vector.extract_strided_slice %88 {offsets = [0, 0], sizes = [8, 384], strides = [1, 1]} : vector<8x512xf32> to vector<8x384xf32>
    %90 = arith.negf %89 : vector<8x384xf32>
    %91 = math.exp %90 : vector<8x384xf32>
    %cst_31 = arith.constant 1.000000e+00 : f32
    %92 = vector.broadcast %cst_31 : f32 to vector<8x384xf32>
    %93 = arith.addf %92, %91 : vector<8x384xf32>
    %94 = arith.divf %92, %93 : vector<8x384xf32>
    %95 = vector.extract_strided_slice %88 {offsets = [0, 384], sizes = [8, 128], strides = [1, 1]} : vector<8x512xf32> to vector<8x128xf32>
    %96 = math.tanh %95 : vector<8x128xf32>
    %97 = vector.extract_strided_slice %94 {offsets = [0, 0], sizes = [8, 128], strides = [1, 1]} : vector<8x384xf32> to vector<8x128xf32>
    %98 = vector.extract_strided_slice %94 {offsets = [0, 128], sizes = [8, 128], strides = [1, 1]} : vector<8x384xf32> to vector<8x128xf32>
    %99 = vector.extract_strided_slice %94 {offsets = [0, 256], sizes = [8, 128], strides = [1, 1]} : vector<8x384xf32> to vector<8x128xf32>
    %100 = arith.mulf %98, %78 : vector<8x128xf32>
    %101 = arith.mulf %97, %96 : vector<8x128xf32>
    %102 = arith.addf %100, %101 : vector<8x128xf32>
    %103 = math.tanh %102 : vector<8x128xf32>
    %104 = arith.mulf %99, %103 : vector<8x128xf32>
    %c4_i32 = arith.constant 4 : i32
    %c8_i32_32 = arith.constant 8 : i32
    %105 = arith.muli %c4_i32, %c8_i32_32 : i32
    %106 = tpu.assume_multiple %105, 8 : i32
    %107 = arith.index_cast %106 : i32 to index
    %c0_33 = arith.constant 0 : index
    %108 = vector.load %arg7[%107, %c0_33] : memref<64x512xf32, #tpu.memory_space<vmem>>, vector<8x512xf32>
    %109 = arith.truncf %104 : vector<8x128xf32> to vector<8x128xbf16>
    %c0_34 = arith.constant 0 : index
    %c0_35 = arith.constant 0 : index
    %110 = vector.load %arg2[%c0_34, %c0_35] : memref<128x512xbf16, #tpu.memory_space<vmem>>, vector<128x512xbf16>
    %cst_36 = arith.constant dense<0.000000e+00> : vector<8x512xf32>
    %111 = tpu.matmul %109, %110, %cst_36 {dimension_numbers = #tpu.dot_dimension_numbers<[1], [0], [0], [1], [0, 0, 1, 1], [], []>} : vector<8x128xbf16>, vector<128x512xbf16>, vector<8x512xf32> -> vector<8x512xf32>
    %112 = arith.addf %108, %111 : vector<8x512xf32>
    %113 = vector.extract_strided_slice %112 {offsets = [0, 0], sizes = [8, 384], strides = [1, 1]} : vector<8x512xf32> to vector<8x384xf32>
    %114 = arith.negf %113 : vector<8x384xf32>
    %115 = math.exp %114 : vector<8x384xf32>
    %cst_37 = arith.constant 1.000000e+00 : f32
    %116 = vector.broadcast %cst_37 : f32 to vector<8x384xf32>
    %117 = arith.addf %116, %115 : vector<8x384xf32>
    %118 = arith.divf %116, %117 : vector<8x384xf32>
    %119 = vector.extract_strided_slice %112 {offsets = [0, 384], sizes = [8, 128], strides = [1, 1]} : vector<8x512xf32> to vector<8x128xf32>
    %120 = math.tanh %119 : vector<8x128xf32>
    %121 = vector.extract_strided_slice %118 {offsets = [0, 0], sizes = [8, 128], strides = [1, 1]} : vector<8x384xf32> to vector<8x128xf32>
    %122 = vector.extract_strided_slice %118 {offsets = [0, 128], sizes = [8, 128], strides = [1, 1]} : vector<8x384xf32> to vector<8x128xf32>
    %123 = vector.extract_strided_slice %118 {offsets = [0, 256], sizes = [8, 128], strides = [1, 1]} : vector<8x384xf32> to vector<8x128xf32>
    %124 = arith.mulf %122, %102 : vector<8x128xf32>
    %125 = arith.mulf %121, %120 : vector<8x128xf32>
    %126 = arith.addf %124, %125 : vector<8x128xf32>
    %127 = math.tanh %126 : vector<8x128xf32>
    %128 = arith.mulf %123, %127 : vector<8x128xf32>
    %c5_i32 = arith.constant 5 : i32
    %c8_i32_38 = arith.constant 8 : i32
    %129 = arith.muli %c5_i32, %c8_i32_38 : i32
    %130 = tpu.assume_multiple %129, 8 : i32
    %131 = arith.index_cast %130 : i32 to index
    %c0_39 = arith.constant 0 : index
    %132 = vector.load %arg7[%131, %c0_39] : memref<64x512xf32, #tpu.memory_space<vmem>>, vector<8x512xf32>
    %133 = arith.truncf %128 : vector<8x128xf32> to vector<8x128xbf16>
    %c0_40 = arith.constant 0 : index
    %c0_41 = arith.constant 0 : index
    %134 = vector.load %arg2[%c0_40, %c0_41] : memref<128x512xbf16, #tpu.memory_space<vmem>>, vector<128x512xbf16>
    %cst_42 = arith.constant dense<0.000000e+00> : vector<8x512xf32>
    %135 = tpu.matmul %133, %134, %cst_42 {dimension_numbers = #tpu.dot_dimension_numbers<[1], [0], [0], [1], [0, 0, 1, 1], [], []>} : vector<8x128xbf16>, vector<128x512xbf16>, vector<8x512xf32> -> vector<8x512xf32>
    %136 = arith.addf %132, %135 : vector<8x512xf32>
    %137 = vector.extract_strided_slice %136 {offsets = [0, 0], sizes = [8, 384], strides = [1, 1]} : vector<8x512xf32> to vector<8x384xf32>
    %138 = arith.negf %137 : vector<8x384xf32>
    %139 = math.exp %138 : vector<8x384xf32>
    %cst_43 = arith.constant 1.000000e+00 : f32
    %140 = vector.broadcast %cst_43 : f32 to vector<8x384xf32>
    %141 = arith.addf %140, %139 : vector<8x384xf32>
    %142 = arith.divf %140, %141 : vector<8x384xf32>
    %143 = vector.extract_strided_slice %136 {offsets = [0, 384], sizes = [8, 128], strides = [1, 1]} : vector<8x512xf32> to vector<8x128xf32>
    %144 = math.tanh %143 : vector<8x128xf32>
    %145 = vector.extract_strided_slice %142 {offsets = [0, 0], sizes = [8, 128], strides = [1, 1]} : vector<8x384xf32> to vector<8x128xf32>
    %146 = vector.extract_strided_slice %142 {offsets = [0, 128], sizes = [8, 128], strides = [1, 1]} : vector<8x384xf32> to vector<8x128xf32>
    %147 = vector.extract_strided_slice %142 {offsets = [0, 256], sizes = [8, 128], strides = [1, 1]} : vector<8x384xf32> to vector<8x128xf32>
    %148 = arith.mulf %146, %126 : vector<8x128xf32>
    %149 = arith.mulf %145, %144 : vector<8x128xf32>
    %150 = arith.addf %148, %149 : vector<8x128xf32>
    %151 = math.tanh %150 : vector<8x128xf32>
    %152 = arith.mulf %147, %151 : vector<8x128xf32>
    %c6_i32 = arith.constant 6 : i32
    %c8_i32_44 = arith.constant 8 : i32
    %153 = arith.muli %c6_i32, %c8_i32_44 : i32
    %154 = tpu.assume_multiple %153, 8 : i32
    %155 = arith.index_cast %154 : i32 to index
    %c0_45 = arith.constant 0 : index
    %156 = vector.load %arg7[%155, %c0_45] : memref<64x512xf32, #tpu.memory_space<vmem>>, vector<8x512xf32>
    %157 = arith.truncf %152 : vector<8x128xf32> to vector<8x128xbf16>
    %c0_46 = arith.constant 0 : index
    %c0_47 = arith.constant 0 : index
    %158 = vector.load %arg2[%c0_46, %c0_47] : memref<128x512xbf16, #tpu.memory_space<vmem>>, vector<128x512xbf16>
    %cst_48 = arith.constant dense<0.000000e+00> : vector<8x512xf32>
    %159 = tpu.matmul %157, %158, %cst_48 {dimension_numbers = #tpu.dot_dimension_numbers<[1], [0], [0], [1], [0, 0, 1, 1], [], []>} : vector<8x128xbf16>, vector<128x512xbf16>, vector<8x512xf32> -> vector<8x512xf32>
    %160 = arith.addf %156, %159 : vector<8x512xf32>
    %161 = vector.extract_strided_slice %160 {offsets = [0, 0], sizes = [8, 384], strides = [1, 1]} : vector<8x512xf32> to vector<8x384xf32>
    %162 = arith.negf %161 : vector<8x384xf32>
    %163 = math.exp %162 : vector<8x384xf32>
    %cst_49 = arith.constant 1.000000e+00 : f32
    %164 = vector.broadcast %cst_49 : f32 to vector<8x384xf32>
    %165 = arith.addf %164, %163 : vector<8x384xf32>
    %166 = arith.divf %164, %165 : vector<8x384xf32>
    %167 = vector.extract_strided_slice %160 {offsets = [0, 384], sizes = [8, 128], strides = [1, 1]} : vector<8x512xf32> to vector<8x128xf32>
    %168 = math.tanh %167 : vector<8x128xf32>
    %169 = vector.extract_strided_slice %166 {offsets = [0, 0], sizes = [8, 128], strides = [1, 1]} : vector<8x384xf32> to vector<8x128xf32>
    %170 = vector.extract_strided_slice %166 {offsets = [0, 128], sizes = [8, 128], strides = [1, 1]} : vector<8x384xf32> to vector<8x128xf32>
    %171 = vector.extract_strided_slice %166 {offsets = [0, 256], sizes = [8, 128], strides = [1, 1]} : vector<8x384xf32> to vector<8x128xf32>
    %172 = arith.mulf %170, %150 : vector<8x128xf32>
    %173 = arith.mulf %169, %168 : vector<8x128xf32>
    %174 = arith.addf %172, %173 : vector<8x128xf32>
    %175 = math.tanh %174 : vector<8x128xf32>
    %176 = arith.mulf %171, %175 : vector<8x128xf32>
    %c7_i32 = arith.constant 7 : i32
    %c8_i32_50 = arith.constant 8 : i32
    %177 = arith.muli %c7_i32, %c8_i32_50 : i32
    %178 = tpu.assume_multiple %177, 8 : i32
    %179 = arith.index_cast %178 : i32 to index
    %c0_51 = arith.constant 0 : index
    %180 = vector.load %arg7[%179, %c0_51] : memref<64x512xf32, #tpu.memory_space<vmem>>, vector<8x512xf32>
    %181 = arith.truncf %176 : vector<8x128xf32> to vector<8x128xbf16>
    %c0_52 = arith.constant 0 : index
    %c0_53 = arith.constant 0 : index
    %182 = vector.load %arg2[%c0_52, %c0_53] : memref<128x512xbf16, #tpu.memory_space<vmem>>, vector<128x512xbf16>
    %cst_54 = arith.constant dense<0.000000e+00> : vector<8x512xf32>
    %183 = tpu.matmul %181, %182, %cst_54 {dimension_numbers = #tpu.dot_dimension_numbers<[1], [0], [0], [1], [0, 0, 1, 1], [], []>} : vector<8x128xbf16>, vector<128x512xbf16>, vector<8x512xf32> -> vector<8x512xf32>
    %184 = arith.addf %180, %183 : vector<8x512xf32>
    %185 = vector.extract_strided_slice %184 {offsets = [0, 0], sizes = [8, 384], strides = [1, 1]} : vector<8x512xf32> to vector<8x384xf32>
    %186 = arith.negf %185 : vector<8x384xf32>
    %187 = math.exp %186 : vector<8x384xf32>
    %cst_55 = arith.constant 1.000000e+00 : f32
    %188 = vector.broadcast %cst_55 : f32 to vector<8x384xf32>
    %189 = arith.addf %188, %187 : vector<8x384xf32>
    %190 = arith.divf %188, %189 : vector<8x384xf32>
    %191 = vector.extract_strided_slice %184 {offsets = [0, 384], sizes = [8, 128], strides = [1, 1]} : vector<8x512xf32> to vector<8x128xf32>
    %192 = math.tanh %191 : vector<8x128xf32>
    %193 = vector.extract_strided_slice %190 {offsets = [0, 0], sizes = [8, 128], strides = [1, 1]} : vector<8x384xf32> to vector<8x128xf32>
    %194 = vector.extract_strided_slice %190 {offsets = [0, 128], sizes = [8, 128], strides = [1, 1]} : vector<8x384xf32> to vector<8x128xf32>
    %195 = vector.extract_strided_slice %190 {offsets = [0, 256], sizes = [8, 128], strides = [1, 1]} : vector<8x384xf32> to vector<8x128xf32>
    %196 = arith.mulf %194, %174 : vector<8x128xf32>
    %197 = arith.mulf %193, %192 : vector<8x128xf32>
    %198 = arith.addf %196, %197 : vector<8x128xf32>
    %199 = math.tanh %198 : vector<8x128xf32>
    %200 = arith.mulf %195, %199 : vector<8x128xf32>
    %c8_i32_56 = arith.constant 8 : i32
    %201 = arith.truncf %200 : vector<8x128xf32> to vector<8x128xbf16>
    %c0_57 = arith.constant 0 : index
    %c0_58 = arith.constant 0 : index
    %202 = vector.load %arg4[%c0_57, %c0_58] : memref<128x128xbf16, #tpu.memory_space<vmem>>, vector<128x128xbf16>
    %cst_59 = arith.constant dense<0.000000e+00> : vector<8x128xf32>
    %203 = tpu.matmul %201, %202, %cst_59 {dimension_numbers = #tpu.dot_dimension_numbers<[1], [0], [0], [1], [0, 0, 1, 1], [], []>} : vector<8x128xbf16>, vector<128x128xbf16>, vector<8x128xf32> -> vector<8x128xf32>
    %c0_60 = arith.constant 0 : index
    %c0_61 = arith.constant 0 : index
    %204 = vector.load %arg5[%c0_60, %c0_61] : memref<1x128xf32, #tpu.memory_space<vmem>>, vector<1x128xf32>
    %205 = vector.broadcast %204 : vector<1x128xf32> to vector<8x128xf32>
    %206 = arith.addf %203, %205 : vector<8x128xf32>
    %c0_62 = arith.constant 0 : index
    %c0_63 = arith.constant 0 : index
    %207 = vector.load %arg6[%c0_62, %c0_63] : memref<8x128xf32, #tpu.memory_space<vmem>>, vector<8x128xf32>
    tpu.vector_store %arg6[%c0_62, %c0_63], %206 {strides = array<i32>} : memref<8x128xf32, #tpu.memory_space<vmem>>, vector<8x128xf32>,
    return
  }
}

</mosaic_0001>

<bundles_post_ra>
// kernel: rnnmodel_new_forward.1
= control target key start
LH: loop header
LB: loop body
LE: loop exit
PB: predicated region body
PF: predicated region fallthrough
CT: control target
= control target key end

     0   :  { %11 = vsyncpa [#allocation4], 0  ;;  %s2819_s0 = inlined_call_operand.vmem [shape: bf16[64,128], index: 0, kind: input, shape index: {}]   ;;  %s2820_s1 = inlined_call_operand.hbm [shape: bf16[128,512], index: 1, kind: input, shape index: {}]   ;;  %s2821_s2 = inlined_call_operand.hbm [shape: bf16[128,512], index: 2, kind: input, shape index: {}]   ;;  %s2822_s3 = inlined_call_operand.vmem [shape: f32[1,512], index: 3, kind: input, shape index: {}]   ;;  %s2823_s4 = inlined_call_operand.vmem [shape: bf16[128,128], index: 4, kind: input, shape index: {}]   ;;  %s2824_s5 = inlined_call_operand.vmem [shape: f32[1,128], index: 5, kind: input, shape index: {}]   ;;  %s2825_s6 = inlined_call_operand.vmem [shape: f32[8,128], index: 6, kind: output, shape index: {}]  }
   0x1   :  { %12 = vsyncpa [#allocation6], 0  ;;  %s2190_s21 = smov [#allocation3]   ;;  %s2142_s25 = scalar_lea.hbm %s2820_s1, 4096 }
   0x2   :  { %s20_s22 = sshll.u32 %s2190_s21, 4  ;;  %p2143_p0 = scmp.ne.s32.totalorder %s2820_s1, %s2142_s25  ;;  %s21_s22 = int_to_ptr.vmem [resolvable:$true] %s20_s22 }
   0x3   :  { %p2146_p1 = scmp.lt.u32.totalorder %s2142_s25, %s2820_s1 }
   0x5   :  { %p2148_p2 = pnand %p2146_p1, %p2143_p0 }
   0x7   :  { %2151 = shalt.err (!%p2148_p2)
}
   0x8   :  { %s2152_s30 = scalar_lea.vmem %s21_s22, 4096  ;;  %p2157_p4 = scmp.lt.s32.totalorder %s21_s22, %s21_s22 }
   0x9   :  { %p2153_p3 = scmp.ne.s32.totalorder %s21_s22, %s2152_s30  ;;  %p2158_p5 = scmp.lt.s32.totalorder %s2152_s30, %s2152_s30 }
   0xb   :  { %p2159_p6 = por %p2158_p5, %p2157_p4 }
   0xd   :  { %p2160_p7 = pnand %p2159_p6, %p2153_p3 }
   0xf   :  { %2163 = shalt.err (!%p2160_p7)
}
  0x10   :  { %s2191_s7 = smov 256   ;;  %s2192_s8 = smov 16  }
  0x11   :  { %26 = dma.hbm_to_vmem [thread:$0]  %s2820_s1, 4096, %s21_s22, [#allocation4], %s2191_s7, %s2191_s7, %s2192_s8  }
  0x12   :  { %s2193_s11 = smov [#allocation5]   ;;  %s2164_s15 = scalar_lea.hbm %s2821_s2, 4096 }
  0x13   :  { %s32_s12 = sshll.u32 %s2193_s11, 4  ;;  %p2165_p8 = scmp.ne.s32.totalorder %s2821_s2, %s2164_s15  ;;  %s33_s12 = int_to_ptr.vmem [resolvable:$true] %s32_s12 }
  0x14   :  { %p2168_p9 = scmp.lt.u32.totalorder %s2164_s15, %s2821_s2 }
  0x16   :  { %p2170_p10 = pnand %p2168_p9, %p2165_p8 }
  0x18   :  { %2173 = shalt.err (!%p2170_p10)
}
  0x19   :  { %s2174_s20 = scalar_lea.vmem %s33_s12, 4096  ;;  %p2179_p12 = scmp.lt.s32.totalorder %s33_s12, %s33_s12 }
  0x1a   :  { %p2175_p11 = scmp.ne.s32.totalorder %s33_s12, %s2174_s20  ;;  %p2180_p13 = scmp.lt.s32.totalorder %s2174_s20, %s2174_s20 }
  0x1c   :  { %p2181_p0 = por %p2180_p13, %p2179_p12 }
  0x1e   :  { %p2182_p1 = pnand %p2181_p0, %p2175_p11 }
  0x20   :  { %2185 = shalt.err (!%p2182_p1)
}
  0x21   :  { %38 = dma.hbm_to_vmem [thread:$0]  %s2821_s2, 4096, %s33_s12, [#allocation6], %s2191_s7, %s2191_s7, %s2192_s8  }
  0x22   :  { %2186 = dma.done.wait [#allocation4], 4096  }
  0x23   :  { %2187 = vsyncadd [#allocation4], 4294963200 }
  0x24   :  { %2188 = dma.done.wait [#allocation6], 4096  }
  0x25   :  { %2189 = vsyncadd [#allocation6], 4294963200  ;;  %v2826_v0 = vmov 0   ;;  %v1874_v1 = vld [vmem:[#allocation3 + $0x4] ss:$16 sps:$4 sm:$0xff]   ;;  %v1935_v44 = vld [vmem:[%s2819_s0 + $0x8] sm:$0xff]  }
  0x26   :  { %330 = vmatprep.mubr.bf16.mxu0 %v2826_v0  ;;  %403 = vmatprep.mubr.bf16.mxu1 %v2826_v0  ;;  %v1876_v2 = vld [vmem:[#allocation3 + $0xc] ss:$16 sps:$4 sm:$0xff]   ;;  %v1878_v3 = vld [vmem:[#allocation3] ss:$16 sps:$4 sm:$0xff]   ;;  %v1879_v4 = vld [vmem:[#allocation3 + $0x8] ss:$16 sps:$4 sm:$0xff]  }
  0x27   :  { %298 = vmatprep.subr.bf16.mxu0 %v1874_v1  ;;  %371 = vmatprep.subr.bf16.mxu1 %v1876_v2  ;;  %v1880_v5 = vld [vmem:[#allocation3 + $0x24] ss:$16 sps:$4 sm:$0xff]   ;;  %v1882_v6 = vld [vmem:[#allocation3 + $0x2c] ss:$16 sps:$4 sm:$0xff]   ;;  %v1884_v7 = vld [vmem:[#allocation3 + $0x20] ss:$16 sps:$4 sm:$0xff]  }
  0x28   :  { %299 = vmatpush1.bf16.msra.mxu0 %v1878_v3  ;;  %372 = vmatpush1.bf16.msra.mxu1 %v1879_v4  ;;  %v1885_v8 = vld [vmem:[#allocation3 + $0x28] ss:$16 sps:$4 sm:$0xff]   ;;  %v1886_v9 = vld [vmem:[#allocation3 + $0x44] ss:$16 sps:$4 sm:$0xff]   ;;  %v1888_v10 = vld [vmem:[#allocation3 + $0x4c] ss:$16 sps:$4 sm:$0xff]  }
  0x29   :  { %300 = vmatprep.subr.bf16.mxu0 %v1880_v5  ;;  %373 = vmatprep.subr.bf16.mxu1 %v1882_v6  ;;  %v1890_v11 = vld [vmem:[#allocation3 + $0x40] ss:$16 sps:$4 sm:$0xff]   ;;  %v1891_v12 = vld [vmem:[#allocation3 + $0x48] ss:$16 sps:$4 sm:$0xff]   ;;  %v1892_v13 = vld [vmem:[#allocation3 + $0x64] ss:$16 sps:$4 sm:$0xff]   ;;  %v94_v6 = vlaneseq }
  0x2a   :  { %v1894_v14 = vld [vmem:[#allocation3 + $0x6c] ss:$16 sps:$4 sm:$0xff]   ;;  %v1896_v15 = vld [vmem:[#allocation3 + $0x60] ss:$16 sps:$4 sm:$0xff]   ;;  %v1897_v16 = vld [vmem:[#allocation3 + $0x68] ss:$16 sps:$4 sm:$0xff]  }
  0x2b   :  { %v1898_v17 = vld [vmem:[#allocation3 + $0x84] ss:$16 sps:$4 sm:$0xff]   ;;  %v1900_v18 = vld [vmem:[#allocation3 + $0x8c] ss:$16 sps:$4 sm:$0xff]   ;;  %v1902_v19 = vld [vmem:[#allocation3 + $0x80] ss:$16 sps:$4 sm:$0xff]  }
  0x2c   :  { %301 = vmatpush1.bf16.msra.mxu0 %v1884_v7  ;;  %374 = vmatpush1.bf16.msra.mxu1 %v1885_v8  ;;  %v1903_v20 = vld [vmem:[#allocation3 + $0x88] ss:$16 sps:$4 sm:$0xff]   ;;  %v1904_v21 = vld [vmem:[#allocation3 + $0xa4] ss:$16 sps:$4 sm:$0xff]   ;;  %v1906_v22 = vld [vmem:[#allocation3 + $0xac] ss:$16 sps:$4 sm:$0xff]  }
  0x2d   :  { %302 = vmatprep.subr.bf16.mxu0 %v1886_v9  ;;  %375 = vmatprep.subr.bf16.mxu1 %v1888_v10  ;;  %v1908_v23 = vld [vmem:[#allocation3 + $0xa0] ss:$16 sps:$4 sm:$0xff]   ;;  %v1909_v24 = vld [vmem:[#allocation3 + $0xa8] ss:$16 sps:$4 sm:$0xff]   ;;  %v1910_v25 = vld [vmem:[#allocation3 + $0xc4] ss:$16 sps:$4 sm:$0xff]  }
  0x2e   :  { %v1912_v26 = vld [vmem:[#allocation3 + $0xcc] ss:$16 sps:$4 sm:$0xff]   ;;  %v1914_v27 = vld [vmem:[#allocation3 + $0xc0] ss:$16 sps:$4 sm:$0xff]   ;;  %v1915_v28 = vld [vmem:[#allocation3 + $0xc8] ss:$16 sps:$4 sm:$0xff]  }
  0x2f   :  { %v1916_v29 = vld [vmem:[#allocation3 + $0xe4] ss:$16 sps:$4 sm:$0xff]   ;;  %v1918_v30 = vld [vmem:[#allocation3 + $0xec] ss:$16 sps:$4 sm:$0xff]   ;;  %v1920_v31 = vld [vmem:[#allocation3 + $0xe0] ss:$16 sps:$4 sm:$0xff]  }
  0x30   :  { %303 = vmatpush1.bf16.msra.mxu0 %v1890_v11  ;;  %376 = vmatpush1.bf16.msra.mxu1 %v1891_v12  ;;  %v1921_v32 = vld [vmem:[#allocation3 + $0xe8] ss:$16 sps:$4 sm:$0xff]   ;;  %v2258_v33 = vld [vmem:[#allocation5 + $0x4] ss:$16 sps:$4 sm:$0xff]   ;;  %v2260_v34 = vld [vmem:[#allocation5 + $0xc] ss:$16 sps:$4 sm:$0xff]  }
  0x31   :  { %304 = vmatprep.subr.bf16.mxu0 %v1892_v13  ;;  %377 = vmatprep.subr.bf16.mxu1 %v1894_v14  ;;  %v1922_v35 = vld [vmem:[%s2819_s0] sm:$0xff]   ;;  %v2267_v37 = vld [vmem:[#allocation5 + $0x8] ss:$16 sps:$4 sm:$0xff]   ;;  %v2273_v39 = vld [vmem:[#allocation5 + $0x2c] ss:$16 sps:$4 sm:$0xff]   ;;  %v95_v7 = vshrl.u32 %v94_v6, 7 }
  0x32   :  { %v2265_v36 = vld [vmem:[#allocation5] ss:$16 sps:$4 sm:$0xff]   ;;  %v2271_v38 = vld [vmem:[#allocation5 + $0x24] ss:$16 sps:$4 sm:$0xff]   ;;  %v2279_v41 = vld [vmem:[#allocation5 + $0x28] ss:$16 sps:$4 sm:$0xff]  }
  0x33   :  { %v2275_v40 = vld [vmem:[#allocation5 + $0x20] ss:$16 sps:$4 sm:$0xff]   ;;  %v2283_v42 = vld [vmem:[#allocation5 + $0x44] ss:$16 sps:$4 sm:$0xff]   ;;  %v2285_v43 = vld [vmem:[#allocation5 + $0x4c] ss:$16 sps:$4 sm:$0xff]  }
  0x34   :  { %305 = vmatpush1.bf16.msra.mxu0 %v1896_v15  ;;  %378 = vmatpush1.bf16.msra.mxu1 %v1897_v16  ;;  %v2292_v45 = vld [vmem:[#allocation5 + $0x40] ss:$16 sps:$4 sm:$0xff]   ;;  %v2294_v46 = vld [vmem:[#allocation5 + $0x48] ss:$16 sps:$4 sm:$0xff]   ;;  %v2298_v47 = vld [vmem:[#allocation5 + $0x64] ss:$16 sps:$4 sm:$0xff]  }
  0x35   :  { %306 = vmatprep.subr.bf16.mxu0 %v1898_v17  ;;  %379 = vmatprep.subr.bf16.mxu1 %v1900_v18  ;;  %v2302_v48 = vld [vmem:[#allocation5 + $0x6c] ss:$16 sps:$4 sm:$0xff]   ;;  %v2304_v49 = vld [vmem:[#allocation5 + $0x60] ss:$16 sps:$4 sm:$0xff]   ;;  %v2306_v50 = vld [vmem:[#allocation5 + $0x68] ss:$16 sps:$4 sm:$0xff]  }
  0x36   :  { %v2310_v51 = vld [vmem:[#allocation5 + $0x84] ss:$16 sps:$4 sm:$0xff]   ;;  %v2314_v52 = vld [vmem:[#allocation5 + $0x8c] ss:$16 sps:$4 sm:$0xff]   ;;  %v2321_v54 = vld [vmem:[#allocation5 + $0x80] ss:$16 sps:$4 sm:$0xff]  }
  0x37   :  { %v1948_v53 = vld [vmem:[%s2819_s0 + $0x10] sm:$0xff]   ;;  %v2323_v55 = vld [vmem:[#allocation5 + $0x88] ss:$16 sps:$4 sm:$0xff]   ;;  %v2327_v57 = vld [vmem:[#allocation5 + $0xac] ss:$16 sps:$4 sm:$0xff]   ;;  %v104_v8 = vsub.s32 2, %v95_v7 }
  0x38   :  { %307 = vmatpush1.bf16.msra.mxu0 %v1902_v19  ;;  %380 = vmatpush1.bf16.msra.mxu1 %v1903_v20  ;;  %v2325_v56 = vld [vmem:[#allocation5 + $0xa4] ss:$16 sps:$4 sm:$0xff]   ;;  %v2335_v58 = vld [vmem:[#allocation5 + $0xa0] ss:$16 sps:$4 sm:$0xff]   ;;  %v2337_v59 = vld [vmem:[#allocation5 + $0xa8] ss:$16 sps:$4 sm:$0xff]  }
  0x39   :  { %308 = vmatprep.subr.bf16.mxu0 %v1904_v21  ;;  %381 = vmatprep.subr.bf16.mxu1 %v1906_v22  ;;  %v2341_v60 = vld [vmem:[#allocation5 + $0xc4] ss:$16 sps:$4 sm:$0xff]   ;;  %v2343_v61 = vld [vmem:[#allocation5 + $0xcc] ss:$16 sps:$4 sm:$0xff]   ;;  %v2352_v63 = vld [vmem:[#allocation5 + $0xc0] ss:$16 sps:$4 sm:$0xff]  }
  0x3a   :  { %v1961_v62 = vld [vmem:[%s2819_s0 + $0x18] sm:$0xff]   ;;  %v2358_v2 = vld [vmem:[#allocation5 + $0xe4] ss:$16 sps:$4 sm:$0xff]   ;;  %v2364_v4 = vld [vmem:[#allocation5 + $0xe0] ss:$16 sps:$4 sm:$0xff]   ;;  %v108_v9 = vsub.s32 3, %v95_v7 }
  0x3b   :  { %v2354_v1 = vld [vmem:[#allocation5 + $0xc8] ss:$16 sps:$4 sm:$0xff]   ;;  %v2360_v3 = vld [vmem:[#allocation5 + $0xec] ss:$16 sps:$4 sm:$0xff]   ;;  %v96_v10 = vsub.s32 0, %v95_v7  ;;  %v100_v12 = vsub.s32 1, %v95_v7 }
  0x3c   :  { %309 = vmatpush1.bf16.msra.mxu0 %v1908_v23  ;;  %382 = vmatpush1.bf16.msra.mxu1 %v1909_v24  ;;  %v2366_v5 = vld [vmem:[#allocation5 + $0xe8] ss:$16 sps:$4 sm:$0xff]   ;;  %v92_v11 = vld [vmem:[%s2822_s3] sm:$0xf]  ;;  %vm2196_vm0 = vmmov 0  }
  0x3d   :  { %310 = vmatprep.subr.bf16.mxu0 %v1910_v25  ;;  %383 = vmatprep.subr.bf16.mxu1 %v1912_v26  ;;  %v2415_v13 = vrot.slane %v92_v11, %v104_v8  ;;  %v2421_v16 = vrot.slane %v92_v11, %v108_v9  ;;  %v97_v17 = vrot.slane %v92_v11, %v96_v10 }
  0x3e   :  { %v101_v20 = vrot.slane %v92_v11, %v100_v12 }
  0x40   :  { %311 = vmatpush1.bf16.msra.mxu0 %v1914_v27  ;;  %384 = vmatpush1.bf16.msra.mxu1 %v1915_v28 }
  0x41   :  { %312 = vmatprep.subr.bf16.mxu0 %v1916_v29  ;;  %385 = vmatprep.subr.bf16.mxu1 %v1918_v30 }
  0x44   :  { %313 = vmatpush1.bf16.msra.mxu0 %v1920_v31  ;;  %386 = vmatpush1.bf16.msra.mxu1 %v1921_v32 }
  0x45   :  { %675 = vmatprep.subr.bf16.mxu0 %v2258_v33  ;;  %716 = vmatprep.subr.bf16.mxu1 %v2260_v34 }
  0x47   :  { %331 = vmatmul.mubr.bf16.vlgmr.msra.gmra.mrb[0].mxu0 %v1922_v35  ;;  %404 = vmatmul.mubr.bf16.vlgmr.msra.gmra.mrb[0].mxu1 %v1922_v35 }
  0x48   :  { %676 = vmatpush1.bf16.msra.mxu0 %v2265_v36  ;;  %717 = vmatpush1.bf16.msra.mxu1 %v2267_v37 }
  0x49   :  { %677 = vmatprep.subr.bf16.mxu0 %v2271_v38  ;;  %718 = vmatprep.subr.bf16.mxu1 %v2273_v39 }
  0x4a   :  { %340 = vmatprep.mubr.bf16.mxu0 %v2826_v0  ;;  %413 = vmatprep.mubr.bf16.mxu1 %v2826_v0 }
  0x4c   :  { %678 = vmatpush1.bf16.msra.mxu0 %v2275_v40  ;;  %719 = vmatpush1.bf16.msra.mxu1 %v2279_v41 }
  0x4d   :  { %679 = vmatprep.subr.bf16.mxu0 %v2283_v42  ;;  %720 = vmatprep.subr.bf16.mxu1 %v2285_v43 }
  0x4f   :  { %341 = vmatmul.mubr.bf16.gmra.mrb[4].mxu0 %v1935_v44  ;;  %414 = vmatmul.mubr.bf16.gmra.mrb[4].mxu1 %v1935_v44 }
  0x50   :  { %680 = vmatpush1.bf16.msra.mxu0 %v2292_v45  ;;  %721 = vmatpush1.bf16.msra.mxu1 %v2294_v46 }
  0x51   :  { %681 = vmatprep.subr.bf16.mxu0 %v2298_v47  ;;  %722 = vmatprep.subr.bf16.mxu1 %v2302_v48 }
  0x52   :  { %350 = vmatprep.mubr.bf16.mxu0 %v2826_v0  ;;  %423 = vmatprep.mubr.bf16.mxu1 %v2826_v0 }
  0x54   :  { %682 = vmatpush1.bf16.msra.mxu0 %v2304_v49  ;;  %723 = vmatpush1.bf16.msra.mxu1 %v2306_v50 }
  0x55   :  { %683 = vmatprep.subr.bf16.mxu0 %v2310_v51  ;;  %724 = vmatprep.subr.bf16.mxu1 %v2314_v52 }
  0x57   :  { %351 = vmatmul.mubr.bf16.gmra.mrb[8].mxu0 %v1948_v53  ;;  %424 = vmatmul.mubr.bf16.gmra.mrb[8].mxu1 %v1948_v53 }
  0x58   :  { %684 = vmatpush1.bf16.msra.mxu0 %v2321_v54  ;;  %725 = vmatpush1.bf16.msra.mxu1 %v2323_v55 }
  0x59   :  { %685 = vmatprep.subr.bf16.mxu0 %v2325_v56  ;;  %726 = vmatprep.subr.bf16.mxu1 %v2327_v57 }
  0x5a   :  { %360 = vmatprep.mubr.bf16.mxu0 %v2826_v0  ;;  %433 = vmatprep.mubr.bf16.mxu1 %v2826_v0 }
  0x5c   :  { %686 = vmatpush1.bf16.msra.mxu0 %v2335_v58  ;;  %727 = vmatpush1.bf16.msra.mxu1 %v2337_v59 }
  0x5d   :  { %687 = vmatprep.subr.bf16.mxu0 %v2341_v60  ;;  %728 = vmatprep.subr.bf16.mxu1 %v2343_v61 }
  0x5f   :  { %361 = vmatmul.mubr.bf16.gmra.mrb[12].mxu0 %v1961_v62  ;;  %434 = vmatmul.mubr.bf16.gmra.mrb[12].mxu1 %v1961_v62 }
  0x60   :  { %688 = vmatpush1.bf16.msra.mxu0 %v2352_v63  ;;  %729 = vmatpush1.bf16.msra.mxu1 %v2354_v1 }
  0x61   :  { %689 = vmatprep.subr.bf16.mxu0 %v2358_v2  ;;  %730 = vmatprep.subr.bf16.mxu1 %v2360_v3 }
  0x62   :  { %707 = vmatprep.mubr.bf16.mxu0 %v2826_v0  ;;  %748 = vmatprep.mubr.bf16.mxu1 %v2826_v0 }
  0x64   :  { %690 = vmatpush1.bf16.msra.mxu0 %v2364_v4  ;;  %731 = vmatpush1.bf16.msra.mxu1 %v2366_v5 }
  0x65   :  { %793 = vmatprep.subr.bf16.mxu0 %v2258_v33  ;;  %834 = vmatprep.subr.bf16.mxu1 %v2260_v34 }
  0x67   :  { %708 = vmatmul.mubr.bf16.vlgmr.msra.gmra.mrb[16].mxu0 %v2826_v0  ;;  %749 = vmatmul.mubr.bf16.vlgmr.msra.gmra.mrb[16].mxu1 %v2826_v0 }
  0x68   :  { %794 = vmatpush1.bf16.msra.mxu0 %v2265_v36  ;;  %835 = vmatpush1.bf16.msra.mxu1 %v2267_v37 }
  0x69   :  { %795 = vmatprep.subr.bf16.mxu0 %v2271_v38  ;;  %836 = vmatprep.subr.bf16.mxu1 %v2273_v39 }
  0x6a   :  { %825 = vmatprep.mubr.bf16.mxu0 %v2826_v0  ;;  %866 = vmatprep.mubr.bf16.mxu1 %v2826_v0 }
  0x6c   :  { %796 = vmatpush1.bf16.msra.mxu0 %v2275_v40  ;;  %837 = vmatpush1.bf16.msra.mxu1 %v2279_v41 }
  0x6d   :  { %797 = vmatprep.subr.bf16.mxu0 %v2283_v42  ;;  %838 = vmatprep.subr.bf16.mxu1 %v2285_v43 }
  0x70   :  { %798 = vmatpush1.bf16.msra.mxu0 %v2292_v45  ;;  %839 = vmatpush1.bf16.msra.mxu1 %v2294_v46 }
  0x71   :  { %799 = vmatprep.subr.bf16.mxu0 %v2298_v47  ;;  %840 = vmatprep.subr.bf16.mxu1 %v2302_v48 }
  0x74   :  { %800 = vmatpush1.bf16.msra.mxu0 %v2304_v49  ;;  %841 = vmatpush1.bf16.msra.mxu1 %v2306_v50 }
  0x75   :  { %801 = vmatprep.subr.bf16.mxu0 %v2310_v51  ;;  %842 = vmatprep.subr.bf16.mxu1 %v2314_v52 }
  0x78   :  { %802 = vmatpush1.bf16.msra.mxu0 %v2321_v54  ;;  %843 = vmatpush1.bf16.msra.mxu1 %v2323_v55 }
  0x79   :  { %803 = vmatprep.subr.bf16.mxu0 %v2325_v56  ;;  %844 = vmatprep.subr.bf16.mxu1 %v2327_v57 }
  0x7c   :  { %804 = vmatpush1.bf16.msra.mxu0 %v2335_v58  ;;  %845 = vmatpush1.bf16.msra.mxu1 %v2337_v59 }
  0x7d   :  { %805 = vmatprep.subr.bf16.mxu0 %v2341_v60  ;;  %846 = vmatprep.subr.bf16.mxu1 %v2343_v61 }
  0x80   :  { %806 = vmatpush1.bf16.msra.mxu0 %v2352_v63  ;;  %847 = vmatpush1.bf16.msra.mxu1 %v2354_v1 }
  0x81   :  { %807 = vmatprep.subr.bf16.mxu0 %v2358_v2  ;;  %848 = vmatprep.subr.bf16.mxu1 %v2360_v3 }
  0x84   :  { %808 = vmatpush1.bf16.msra.mxu0 %v2364_v4  ;;  %849 = vmatpush1.bf16.msra.mxu1 %v2366_v5 }
  0x85   :  { %911 = vmatprep.subr.bf16.mxu0 %v2258_v33  ;;  %952 = vmatprep.subr.bf16.mxu1 %v2260_v34 }
 0x11a   :  { %v2417_v14 = vpop.f32.mrb[0].mxu0  ;;  %v2419_v15 = vpop.f32.mrb[0].mxu1 }
 0x11b   :  { %v334_v18 = vpop.f32.mrb[1].mxu0  ;;  %v407_v19 = vpop.f32.mrb[1].mxu1 }
 0x11c   :  { %v336_v21 = vpop.f32.mrb[2].mxu0  ;;  %v409_v22 = vpop.f32.mrb[2].mxu1 }
 0x11d   :  { %v2423_v23 = vadd.f32 %v336_v21, %v97_v17  ;;  %v338_v24 = vpop.f32.mrb[3].mxu0  ;;  %v2426_v25 = vadd.f32 %v409_v22, %v2415_v13  ;;  %v411_v26 = vpop.f32.mrb[3].mxu1 }
 0x11e   :  { %v2428_v27 = vadd.f32 %v338_v24, %v101_v20  ;;  %v2431_v28 = vadd.f32 %v411_v26, %v2421_v16 }
 0x122   :  { %v342_v29 = vpop.f32.mrb[4].mxu0  ;;  %v415_v30 = vpop.f32.mrb[4].mxu1 }
 0x123   :  { %v2433_v31 = vadd.f32 %v342_v29, %v97_v17  ;;  %v344_v32 = vpop.f32.mrb[5].mxu0  ;;  %v2436_v35 = vadd.f32 %v415_v30, %v2415_v13  ;;  %v417_v44 = vpop.f32.mrb[5].mxu1 }
 0x124   :  { %v2438_v53 = vadd.f32 %v344_v32, %v101_v20  ;;  %v346_v62 = vpop.f32.mrb[6].mxu0  ;;  %v2441_v6 = vadd.f32 %v417_v44, %v2421_v16  ;;  %v419_v7 = vpop.f32.mrb[6].mxu1 }
 0x125   :  { %v2443_v8 = vadd.f32 %v346_v62, %v97_v17  ;;  %v348_v9 = vpop.f32.mrb[7].mxu0  ;;  %v2446_v10 = vadd.f32 %v419_v7, %v2415_v13  ;;  %v421_v11 = vpop.f32.mrb[7].mxu1 }
 0x126   :  { %2828 = vst [vmem:[#allocation9_spill] sm:$0xff] %v2441_v6  ;;  %v2448_v12 = vadd.f32 %v348_v9, %v101_v20  ;;  %v2451_v21 = vadd.f32 %v421_v11, %v2421_v16 }
 0x127   :  { %2829 = vst [vmem:[#allocation10_spill] sm:$0xff] %v2443_v8  ;;  %2830 = vst [vmem:[#allocation11_spill] sm:$0xff] %v2446_v10 }
 0x128   :  { %2831 = vst [vmem:[#allocation12_spill] sm:$0xff] %v2448_v12  ;;  %2832 = vst [vmem:[#allocation13_spill] sm:$0xff] %v2451_v21 }
 0x12a   :  { %v352_v22 = vpop.f32.mrb[8].mxu0  ;;  %v425_v24 = vpop.f32.mrb[8].mxu1 }
 0x12b   :  { %v2453_v26 = vadd.f32 %v352_v22, %v97_v17  ;;  %v354_v29 = vpop.f32.mrb[9].mxu0  ;;  %v2456_v30 = vadd.f32 %v425_v24, %v2415_v13  ;;  %v427_v32 = vpop.f32.mrb[9].mxu1 }
 0x12c   :  { %v2458_v44 = vadd.f32 %v354_v29, %v101_v20  ;;  %v356_v62 = vpop.f32.mrb[10].mxu0  ;;  %v2461_v7 = vadd.f32 %v427_v32, %v2421_v16  ;;  %v429_v9 = vpop.f32.mrb[10].mxu1 }
 0x12d   :  { %2833 = vst [vmem:[#allocation14_spill] sm:$0xff] %v2453_v26  ;;  %2834 = vst [vmem:[#allocation15_spill] sm:$0xff] %v2456_v30  ;;  %v2463_v0 = vadd.f32 %v356_v62, %v97_v17  ;;  %v358_v11 = vpop.f32.mrb[11].mxu0  ;;  %v2466_v21 = vadd.f32 %v429_v9, %v2415_v13  ;;  %v431_v22 = vpop.f32.mrb[11].mxu1 }
 0x12e   :  { %2835 = vst [vmem:[#allocation16_spill] sm:$0xff] %v2458_v44  ;;  %2836 = vst [vmem:[#allocation17_spill] sm:$0xff] %v2461_v7  ;;  %v2468_v26 = vadd.f32 %v358_v11, %v101_v20  ;;  %v2471_v24 = vadd.f32 %v431_v22, %v2421_v16 }
 0x12f   :  { %2837 = vst [vmem:[#allocation18_spill] sm:$0xff] %v2463_v0  ;;  %2838 = vst [vmem:[#allocation19_spill] sm:$0xff] %v2466_v21 }
 0x130   :  { %2839 = vst [vmem:[#allocation20_spill] sm:$0xff] %v2468_v26  ;;  %2840 = vst [vmem:[#allocation21_spill] sm:$0xff] %v2471_v24 }
 0x132   :  { %v362_v30 = vpop.f32.mrb[12].mxu0  ;;  %v435_v29 = vpop.f32.mrb[12].mxu1 }
 0x133   :  { %v2473_v44 = vadd.f32 %v362_v30, %v97_v17  ;;  %v364_v12 = vpop.f32.mrb[13].mxu0  ;;  %v2476_v32 = vadd.f32 %v435_v29, %v2415_v13  ;;  %v437_v62 = vpop.f32.mrb[13].mxu1 }
 0x134   :  { %v2478_v0 = vadd.f32 %v364_v12, %v101_v20  ;;  %v366_v7 = vpop.f32.mrb[14].mxu0  ;;  %v2481_v9 = vadd.f32 %v437_v62, %v2421_v16  ;;  %v439_v11 = vpop.f32.mrb[14].mxu1  ;;  %v333_v12 = vadd.f32 %v2417_v14, %v97_v17  ;;  %v335_v62 = vadd.f32 %v334_v18, %v101_v20 }
 0x135   :  { %2841 = vst [vmem:[#allocation22_spill] sm:$0xff] %v2473_v44  ;;  %2842 = vst [vmem:[#allocation23_spill] sm:$0xff] %v2476_v32  ;;  %v2483_v26 = vadd.f32 %v366_v7, %v97_v17  ;;  %v368_v22 = vpop.f32.mrb[15].mxu0  ;;  %v2486_v24 = vadd.f32 %v439_v11, %v2415_v13  ;;  %v441_v30 = vpop.f32.mrb[15].mxu1 }
 0x136   :  { %2843 = vst [vmem:[#allocation24_spill] sm:$0xff] %v2478_v0  ;;  %2844 = vst [vmem:[#allocation25_spill] sm:$0xff] %v2481_v9  ;;  %v2488_v44 = vadd.f32 %v368_v22, %v101_v20  ;;  %v2491_v29 = vadd.f32 %v441_v30, %v2421_v16  ;;  %v406_v0 = vadd.f32 %v2419_v15, %v2415_v13 }
 0x137   :  { %2845 = vst [vmem:[#allocation26_spill] sm:$0xff] %v2483_v26  ;;  %2846 = vst [vmem:[#allocation27_spill] sm:$0xff] %v2486_v24  ;;  %v408_v9 = vadd.f32 %v407_v19, %v2421_v16 }
 0x138   :  { %2847 = vst [vmem:[#allocation28_spill] sm:$0xff] %v2488_v44  ;;  %2848 = vst [vmem:[#allocation29_spill] sm:$0xff] %v2491_v29 }
 0x13a   :  { %v709_v7 = vpop.f32.mrb[16].mxu0  ;;  %v750_v26 = vpop.f32.mrb[16].mxu1 }
 0x13b   :  { %v757_v32 = vadd.f32 %v709_v7, %v333_v12  ;;  %v759_v21 = vadd.f32 %v750_v26, %v406_v0  ;;  %v711_v11 = vpop.f32.mrb[17].mxu0  ;;  %v752_v24 = vpop.f32.mrb[17].mxu1 }
 0x13c   :  { %v758_v10 = vadd.f32 %v711_v11, %v335_v62  ;;  %v760_v22 = vadd.f32 %v752_v24, %v408_v9  ;;  %v713_v44 = vpop.f32.mrb[18].mxu0  ;;  %v754_v8 = vpop.f32.mrb[18].mxu1 }
 0x13d   :  { %v1805_v30 = vmul.f32 -1.442695, %v757_v32  ;;  %v714_v29 = vpop.f32.mrb[19].mxu0  ;;  %v755_v6 = vpop.f32.mrb[19].mxu1  ;;  %v1807_v13 = vmul.f32 -1.442695, %v759_v21 }
 0x13e   :  { %v1806_v14 = vmul.f32 -1.442695, %v758_v10  ;;  %v2849_v29 = vmov 0  }
 0x13f   :  { %1982 = vpow2.f32 %v1805_v30 }
 0x140   :  { %1984 = vpow2.f32 %v1806_v14 }
 0x141   :  { %1986 = vtanh.f32 %v760_v22 }
 0x142   :  { %1988 = vpow2.f32 %v1807_v13 }
 0x149   :  { %v1983_v15 = vpop.eup %1982 }
 0x14a   :  { %v770_v17 = vadd.f32 1.0, %v1983_v15  ;;  %v1985_v16 = vpop.eup %1984 }
 0x14b   :  { %v771_v0 = vadd.f32 1.0, %v1985_v16  ;;  %v1987_v18 = vpop.eup %1986 }
 0x14c   :  { %1990 = vrcp.f32 %v770_v17  ;;  %v1989_v19 = vpop.eup %1988 }
 0x14d   :  { %1992 = vrcp.f32 %v771_v0  ;;  %v772_v44 = vadd.f32 1.0, %v1989_v19 }
 0x14f   :  { %1994 = vrcp.f32 %v772_v44 }
 0x156   :  { %v1991_v20 = vpop.eup %1990 }
 0x157   :  { %v781_v26 = vmul.f32 %v1991_v20, %v1987_v18  ;;  %v1993_v8 = vpop.eup %1992 }
 0x158   :  { %v780_v24 = vmul.f32 0.0, %v1993_v8 }
 0x159   :  { %v1995_v10 = vpop.eup %1994 }
 0x15a   :  { %v2497_v6 = vadd.f32 %v781_v26, %v780_v24 }
 0x15c   :  { %1996 = vtanh.f32 %v2497_v6 }
 0x166   :  { %v1997_v21 = vpop.eup %1996 }
 0x167   :  { %v784_v32 = vmul.f32 %v1997_v21, %v1995_v10 }
 0x169   :  { %v792_v9 = vpack.c.bf16 %v784_v32, %v784_v32 }
 0x16b   :  { %826 = vmatmul.mubr.bf16.vlgmr.msra.gmra.mrb[20].mxu0 %v792_v9  ;;  %867 = vmatmul.mubr.bf16.vlgmr.msra.gmra.mrb[20].mxu1 %v792_v9 }
 0x16c   :  { %912 = vmatpush1.bf16.msra.mxu0 %v2265_v36  ;;  %953 = vmatpush1.bf16.msra.mxu1 %v2267_v37 }
 0x16d   :  { %913 = vmatprep.subr.bf16.mxu0 %v2271_v38  ;;  %954 = vmatprep.subr.bf16.mxu1 %v2273_v39 }
 0x16e   :  { %943 = vmatprep.mubr.bf16.mxu0 %v2849_v29  ;;  %984 = vmatprep.mubr.bf16.mxu1 %v2849_v29 }
 0x170   :  { %914 = vmatpush1.bf16.msra.mxu0 %v2275_v40  ;;  %955 = vmatpush1.bf16.msra.mxu1 %v2279_v41 }
 0x171   :  { %915 = vmatprep.subr.bf16.mxu0 %v2283_v42  ;;  %956 = vmatprep.subr.bf16.mxu1 %v2285_v43 }
 0x174   :  { %916 = vmatpush1.bf16.msra.mxu0 %v2292_v45  ;;  %957 = vmatpush1.bf16.msra.mxu1 %v2294_v46 }
 0x175   :  { %917 = vmatprep.subr.bf16.mxu0 %v2298_v47  ;;  %958 = vmatprep.subr.bf16.mxu1 %v2302_v48 }
 0x178   :  { %918 = vmatpush1.bf16.msra.mxu0 %v2304_v49  ;;  %959 = vmatpush1.bf16.msra.mxu1 %v2306_v50 }
 0x179   :  { %919 = vmatprep.subr.bf16.mxu0 %v2310_v51  ;;  %960 = vmatprep.subr.bf16.mxu1 %v2314_v52 }
 0x17c   :  { %920 = vmatpush1.bf16.msra.mxu0 %v2321_v54  ;;  %961 = vmatpush1.bf16.msra.mxu1 %v2323_v55 }
 0x17d   :  { %921 = vmatprep.subr.bf16.mxu0 %v2325_v56  ;;  %962 = vmatprep.subr.bf16.mxu1 %v2327_v57 }
 0x180   :  { %922 = vmatpush1.bf16.msra.mxu0 %v2335_v58  ;;  %963 = vmatpush1.bf16.msra.mxu1 %v2337_v59 }
 0x181   :  { %923 = vmatprep.subr.bf16.mxu0 %v2341_v60  ;;  %964 = vmatprep.subr.bf16.mxu1 %v2343_v61 }
 0x184   :  { %924 = vmatpush1.bf16.msra.mxu0 %v2352_v63  ;;  %965 = vmatpush1.bf16.msra.mxu1 %v2354_v1 }
 0x185   :  { %925 = vmatprep.subr.bf16.mxu0 %v2358_v2  ;;  %966 = vmatprep.subr.bf16.mxu1 %v2360_v3 }
 0x188   :  { %926 = vmatpush1.bf16.msra.mxu0 %v2364_v4  ;;  %967 = vmatpush1.bf16.msra.mxu1 %v2366_v5 }
 0x189   :  { %1029 = vmatprep.subr.bf16.mxu0 %v2258_v33  ;;  %1070 = vmatprep.subr.bf16.mxu1 %v2260_v34 }
 0x23e   :  { %v827_v12 = vpop.f32.mrb[20].mxu0  ;;  %v868_v62 = vpop.f32.mrb[20].mxu1 }
 0x23f   :  { %v875_v7 = vadd.f32 %v827_v12, %v2423_v23  ;;  %v877_v11 = vadd.f32 %v868_v62, %v2426_v25  ;;  %v829_v22 = vpop.f32.mrb[21].mxu0  ;;  %v870_v30 = vpop.f32.mrb[21].mxu1 }
 0x240   :  { %v876_v14 = vadd.f32 %v829_v22, %v2428_v27  ;;  %v878_v13 = vadd.f32 %v870_v30, %v2431_v28  ;;  %v831_v15 = vpop.f32.mrb[22].mxu0  ;;  %v872_v17 = vpop.f32.mrb[22].mxu1 }
 0x241   :  { %v1808_v16 = vmul.f32 -1.442695, %v875_v7  ;;  %v832_v0 = vpop.f32.mrb[23].mxu0  ;;  %v873_v18 = vpop.f32.mrb[23].mxu1  ;;  %v1810_v20 = vmul.f32 -1.442695, %v877_v11 }
 0x242   :  { %v1809_v19 = vmul.f32 -1.442695, %v876_v14 }
 0x243   :  { %1998 = vpow2.f32 %v1808_v16  ;;  %v2850_v16 = vld [vmem:[#allocation9_spill] sm:$0xff] }
 0x244   :  { %2000 = vpow2.f32 %v1809_v19 }
 0x245   :  { %2002 = vtanh.f32 %v878_v13 }
 0x246   :  { %2004 = vpow2.f32 %v1810_v20 }
 0x24d   :  { %v1999_v26 = vpop.eup %1998 }
 0x24e   :  { %v888_v8 = vadd.f32 1.0, %v1999_v26  ;;  %v2001_v23 = vpop.eup %2000 }
 0x24f   :  { %v889_v25 = vadd.f32 1.0, %v2001_v23  ;;  %v2003_v27 = vpop.eup %2002 }
 0x250   :  { %2006 = vrcp.f32 %v888_v8  ;;  %v2005_v44 = vpop.eup %2004 }
 0x251   :  { %2008 = vrcp.f32 %v889_v25  ;;  %v890_v21 = vadd.f32 1.0, %v2005_v44 }
 0x253   :  { %2010 = vrcp.f32 %v890_v21 }
 0x25a   :  { %v2007_v28 = vpop.eup %2006 }
 0x25b   :  { %v899_v24 = vmul.f32 %v2007_v28, %v2003_v27  ;;  %v2009_v10 = vpop.eup %2008 }
 0x25c   :  { %v898_v32 = vmul.f32 %v2009_v10, %v2497_v6 }
 0x25d   :  { %v2011_v12 = vpop.eup %2010 }
 0x25e   :  { %v2539_v9 = vadd.f32 %v899_v24, %v898_v32 }
 0x260   :  { %2012 = vtanh.f32 %v2539_v9 }
 0x26a   :  { %v2013_v62 = vpop.eup %2012 }
 0x26b   :  { %v902_v7 = vmul.f32 %v2013_v62, %v2011_v12 }
 0x26d   :  { %v910_v11 = vpack.c.bf16 %v902_v7, %v902_v7 }
 0x26f   :  { %944 = vmatmul.mubr.bf16.vlgmr.msra.gmra.mrb[24].mxu0 %v910_v11  ;;  %985 = vmatmul.mubr.bf16.vlgmr.msra.gmra.mrb[24].mxu1 %v910_v11 }
 0x270   :  { %1030 = vmatpush1.bf16.msra.mxu0 %v2265_v36  ;;  %1071 = vmatpush1.bf16.msra.mxu1 %v2267_v37 }
 0x271   :  { %1031 = vmatprep.subr.bf16.mxu0 %v2271_v38  ;;  %1072 = vmatprep.subr.bf16.mxu1 %v2273_v39 }
 0x272   :  { %1061 = vmatprep.mubr.bf16.mxu0 %v2849_v29  ;;  %1102 = vmatprep.mubr.bf16.mxu1 %v2849_v29 }
 0x274   :  { %1032 = vmatpush1.bf16.msra.mxu0 %v2275_v40  ;;  %1073 = vmatpush1.bf16.msra.mxu1 %v2279_v41 }
 0x275   :  { %1033 = vmatprep.subr.bf16.mxu0 %v2283_v42  ;;  %1074 = vmatprep.subr.bf16.mxu1 %v2285_v43 }
 0x278   :  { %1034 = vmatpush1.bf16.msra.mxu0 %v2292_v45  ;;  %1075 = vmatpush1.bf16.msra.mxu1 %v2294_v46 }
 0x279   :  { %1035 = vmatprep.subr.bf16.mxu0 %v2298_v47  ;;  %1076 = vmatprep.subr.bf16.mxu1 %v2302_v48 }
 0x27c   :  { %1036 = vmatpush1.bf16.msra.mxu0 %v2304_v49  ;;  %1077 = vmatpush1.bf16.msra.mxu1 %v2306_v50 }
 0x27d   :  { %1037 = vmatprep.subr.bf16.mxu0 %v2310_v51  ;;  %1078 = vmatprep.subr.bf16.mxu1 %v2314_v52 }
 0x280   :  { %1038 = vmatpush1.bf16.msra.mxu0 %v2321_v54  ;;  %1079 = vmatpush1.bf16.msra.mxu1 %v2323_v55 }
 0x281   :  { %1039 = vmatprep.subr.bf16.mxu0 %v2325_v56  ;;  %1080 = vmatprep.subr.bf16.mxu1 %v2327_v57 }
 0x284   :  { %1040 = vmatpush1.bf16.msra.mxu0 %v2335_v58  ;;  %1081 = vmatpush1.bf16.msra.mxu1 %v2337_v59 }
 0x285   :  { %1041 = vmatprep.subr.bf16.mxu0 %v2341_v60  ;;  %1082 = vmatprep.subr.bf16.mxu1 %v2343_v61 }
 0x288   :  { %1042 = vmatpush1.bf16.msra.mxu0 %v2352_v63  ;;  %1083 = vmatpush1.bf16.msra.mxu1 %v2354_v1 }
 0x289   :  { %1043 = vmatprep.subr.bf16.mxu0 %v2358_v2  ;;  %1084 = vmatprep.subr.bf16.mxu1 %v2360_v3 }
 0x28c   :  { %1044 = vmatpush1.bf16.msra.mxu0 %v2364_v4  ;;  %1085 = vmatpush1.bf16.msra.mxu1 %v2366_v5 }
 0x28d   :  { %1147 = vmatprep.subr.bf16.mxu0 %v2258_v33  ;;  %1188 = vmatprep.subr.bf16.mxu1 %v2260_v34 }
 0x342   :  { %v945_v6 = vpop.f32.mrb[24].mxu0  ;;  %v986_v22 = vpop.f32.mrb[24].mxu1 }
 0x343   :  { %v993_v30 = vadd.f32 %v945_v6, %v2433_v31  ;;  %v995_v14 = vadd.f32 %v986_v22, %v2436_v35  ;;  %v947_v13 = vpop.f32.mrb[25].mxu0  ;;  %v988_v15 = vpop.f32.mrb[25].mxu1 }
 0x344   :  { %v994_v17 = vadd.f32 %v947_v13, %v2438_v53  ;;  %v996_v0 = vadd.f32 %v988_v15, %v2850_v16  ;;  %v949_v18 = vpop.f32.mrb[26].mxu0  ;;  %v990_v19 = vpop.f32.mrb[26].mxu1  ;;  %v2852_v15 = vld [vmem:[#allocation11_spill] sm:$0xff] }
 0x345   :  { %v1811_v20 = vmul.f32 -1.442695, %v993_v30  ;;  %v950_v26 = vpop.f32.mrb[27].mxu0  ;;  %v991_v8 = vpop.f32.mrb[27].mxu1  ;;  %v1813_v25 = vmul.f32 -1.442695, %v995_v14 }
 0x346   :  { %v1812_v23 = vmul.f32 -1.442695, %v994_v17  ;;  %v2851_v14 = vld [vmem:[#allocation10_spill] sm:$0xff]  ;;  %v2853_v18 = vld [vmem:[#allocation12_spill] sm:$0xff] }
 0x347   :  { %2014 = vpow2.f32 %v1811_v20  ;;  %v2854_v20 = vld [vmem:[#allocation13_spill] sm:$0xff] }
 0x348   :  { %2016 = vpow2.f32 %v1812_v23 }
 0x349   :  { %2018 = vtanh.f32 %v996_v0 }
 0x34a   :  { %2020 = vpow2.f32 %v1813_v25 }
 0x351   :  { %v2015_v27 = vpop.eup %2014 }
 0x352   :  { %v1006_v44 = vadd.f32 1.0, %v2015_v27  ;;  %v2017_v31 = vpop.eup %2016 }
 0x353   :  { %v1007_v35 = vadd.f32 1.0, %v2017_v31  ;;  %v2019_v53 = vpop.eup %2018 }
 0x354   :  { %2022 = vrcp.f32 %v1006_v44  ;;  %v2021_v28 = vpop.eup %2020 }
 0x355   :  { %2024 = vrcp.f32 %v1007_v35  ;;  %v1008_v32 = vadd.f32 1.0, %v2021_v28 }
 0x357   :  { %2026 = vrcp.f32 %v1008_v32 }
 0x35e   :  { %v2023_v24 = vpop.eup %2022 }
 0x35f   :  { %v1017_v10 = vmul.f32 %v2023_v24, %v2019_v53  ;;  %v2025_v21 = vpop.eup %2024 }
 0x360   :  { %v1016_v12 = vmul.f32 %v2025_v21, %v2539_v9 }
 0x361   :  { %v2027_v7 = vpop.eup %2026 }
 0x362   :  { %v2581_v62 = vadd.f32 %v1017_v10, %v1016_v12 }
 0x364   :  { %2028 = vtanh.f32 %v2581_v62 }
 0x36e   :  { %v2029_v11 = vpop.eup %2028 }
 0x36f   :  { %v1020_v6 = vmul.f32 %v2029_v11, %v2027_v7 }
 0x371   :  { %v1028_v22 = vpack.c.bf16 %v1020_v6, %v1020_v6 }
 0x373   :  { %1062 = vmatmul.mubr.bf16.vlgmr.msra.gmra.mrb[28].mxu0 %v1028_v22  ;;  %1103 = vmatmul.mubr.bf16.vlgmr.msra.gmra.mrb[28].mxu1 %v1028_v22 }
 0x374   :  { %1148 = vmatpush1.bf16.msra.mxu0 %v2265_v36  ;;  %1189 = vmatpush1.bf16.msra.mxu1 %v2267_v37 }
 0x375   :  { %1149 = vmatprep.subr.bf16.mxu0 %v2271_v38  ;;  %1190 = vmatprep.subr.bf16.mxu1 %v2273_v39 }
 0x376   :  { %1179 = vmatprep.mubr.bf16.mxu0 %v2849_v29  ;;  %1220 = vmatprep.mubr.bf16.mxu1 %v2849_v29 }
 0x378   :  { %1150 = vmatpush1.bf16.msra.mxu0 %v2275_v40  ;;  %1191 = vmatpush1.bf16.msra.mxu1 %v2279_v41 }
 0x379   :  { %1151 = vmatprep.subr.bf16.mxu0 %v2283_v42  ;;  %1192 = vmatprep.subr.bf16.mxu1 %v2285_v43 }
 0x37c   :  { %1152 = vmatpush1.bf16.msra.mxu0 %v2292_v45  ;;  %1193 = vmatpush1.bf16.msra.mxu1 %v2294_v46 }
 0x37d   :  { %1153 = vmatprep.subr.bf16.mxu0 %v2298_v47  ;;  %1194 = vmatprep.subr.bf16.mxu1 %v2302_v48 }
 0x380   :  { %1154 = vmatpush1.bf16.msra.mxu0 %v2304_v49  ;;  %1195 = vmatpush1.bf16.msra.mxu1 %v2306_v50 }
 0x381   :  { %1155 = vmatprep.subr.bf16.mxu0 %v2310_v51  ;;  %1196 = vmatprep.subr.bf16.mxu1 %v2314_v52 }
 0x384   :  { %1156 = vmatpush1.bf16.msra.mxu0 %v2321_v54  ;;  %1197 = vmatpush1.bf16.msra.mxu1 %v2323_v55 }
 0x385   :  { %1157 = vmatprep.subr.bf16.mxu0 %v2325_v56  ;;  %1198 = vmatprep.subr.bf16.mxu1 %v2327_v57 }
 0x388   :  { %1158 = vmatpush1.bf16.msra.mxu0 %v2335_v58  ;;  %1199 = vmatpush1.bf16.msra.mxu1 %v2337_v59 }
 0x389   :  { %1159 = vmatprep.subr.bf16.mxu0 %v2341_v60  ;;  %1200 = vmatprep.subr.bf16.mxu1 %v2343_v61 }
 0x38c   :  { %1160 = vmatpush1.bf16.msra.mxu0 %v2352_v63  ;;  %1201 = vmatpush1.bf16.msra.mxu1 %v2354_v1 }
 0x38d   :  { %1161 = vmatprep.subr.bf16.mxu0 %v2358_v2  ;;  %1202 = vmatprep.subr.bf16.mxu1 %v2360_v3 }
 0x390   :  { %1162 = vmatpush1.bf16.msra.mxu0 %v2364_v4  ;;  %1203 = vmatpush1.bf16.msra.mxu1 %v2366_v5 }
 0x391   :  { %1265 = vmatprep.subr.bf16.mxu0 %v2258_v33  ;;  %1306 = vmatprep.subr.bf16.mxu1 %v2260_v34 }
 0x446   :  { %v1063_v9 = vpop.f32.mrb[28].mxu0  ;;  %v1104_v30 = vpop.f32.mrb[28].mxu1 }
 0x447   :  { %v1111_v13 = vadd.f32 %v1063_v9, %v2851_v14  ;;  %v1113_v17 = vadd.f32 %v1104_v30, %v2852_v15  ;;  %v1065_v16 = vpop.f32.mrb[29].mxu0  ;;  %v1106_v0 = vpop.f32.mrb[29].mxu1 }
 0x448   :  { %v1112_v19 = vadd.f32 %v1065_v16, %v2853_v18  ;;  %v1114_v26 = vadd.f32 %v1106_v0, %v2854_v20  ;;  %v1067_v8 = vpop.f32.mrb[30].mxu0  ;;  %v1108_v23 = vpop.f32.mrb[30].mxu1 }
 0x449   :  { %v1814_v25 = vmul.f32 -1.442695, %v1111_v13  ;;  %v1068_v27 = vpop.f32.mrb[31].mxu0  ;;  %v1109_v44 = vpop.f32.mrb[31].mxu1  ;;  %v1816_v34 = vmul.f32 -1.442695, %v1113_v17 }
 0x44a   :  { %v1815_v33 = vmul.f32 -1.442695, %v1112_v19 }
 0x44b   :  { %2030 = vpow2.f32 %v1814_v25 }
 0x44c   :  { %2032 = vpow2.f32 %v1815_v33 }
 0x44d   :  { %2034 = vtanh.f32 %v1114_v26 }
 0x44e   :  { %2036 = vpow2.f32 %v1816_v34 }
 0x455   :  { %v2031_v31 = vpop.eup %2030 }
 0x456   :  { %v1124_v35 = vadd.f32 1.0, %v2031_v31  ;;  %v2033_v53 = vpop.eup %2032  ;;  %v2672_v31 = vld [vmem:[#allocation5] ss:$16 sps:$4 sm:$0xff]  }
 0x457   :  { %v1125_v28 = vadd.f32 1.0, %v2033_v53  ;;  %v2035_v24 = vpop.eup %2034  ;;  %v2678_v53 = vld [vmem:[#allocation5 + $0x24] ss:$16 sps:$4 sm:$0xff]  }
 0x458   :  { %2038 = vrcp.f32 %v1124_v35  ;;  %v2037_v10 = vpop.eup %2036  ;;  %v2675_v35 = vld [vmem:[#allocation5 + $0x8] ss:$16 sps:$4 sm:$0xff]  }
 0x459   :  { %2040 = vrcp.f32 %v1125_v28  ;;  %v1126_v7 = vadd.f32 1.0, %v2037_v10  ;;  %v2681_v28 = vld [vmem:[#allocation5 + $0x2c] ss:$16 sps:$4 sm:$0xff]   ;;  %v2689_v10 = vld [vmem:[#allocation5 + $0x28] ss:$16 sps:$4 sm:$0xff]  }
 0x45b   :  { %2042 = vrcp.f32 %v1126_v7  ;;  %v2701_v7 = vld [vmem:[#allocation5 + $0x48] ss:$16 sps:$4 sm:$0xff]  }
 0x462   :  { %v2039_v21 = vpop.eup %2038 }
 0x463   :  { %v1135_v32 = vmul.f32 %v2039_v21, %v2035_v24  ;;  %v2041_v12 = vpop.eup %2040  ;;  %v2686_v24 = vld [vmem:[#allocation5 + $0x20] ss:$16 sps:$4 sm:$0xff]   ;;  %v2692_v21 = vld [vmem:[#allocation5 + $0x44] ss:$16 sps:$4 sm:$0xff]  }
 0x464   :  { %v1134_v11 = vmul.f32 %v2041_v12, %v2581_v62  ;;  %v2698_v12 = vld [vmem:[#allocation5 + $0x40] ss:$16 sps:$4 sm:$0xff]  }
 0x465   :  { %v2043_v22 = vpop.eup %2042 }
 0x466   :  { %v2623_v6 = vadd.f32 %v1135_v32, %v1134_v11  ;;  %v2695_v32 = vld [vmem:[#allocation5 + $0x4c] ss:$16 sps:$4 sm:$0xff]   ;;  %v2704_v11 = vld [vmem:[#allocation5 + $0x64] ss:$16 sps:$4 sm:$0xff]  }
 0x468   :  { %2044 = vtanh.f32 %v2623_v6 }
 0x472   :  { %v2045_v9 = vpop.eup %2044 }
 0x473   :  { %v1138_v30 = vmul.f32 %v2045_v9, %v2043_v22  ;;  %v2710_v22 = vld [vmem:[#allocation5 + $0x60] ss:$16 sps:$4 sm:$0xff]   ;;  %v2713_v9 = vld [vmem:[#allocation5 + $0x68] ss:$16 sps:$4 sm:$0xff]  }
 0x475   :  { %v1146_v14 = vpack.c.bf16 %v1138_v30, %v1138_v30  ;;  %v2716_v30 = vld [vmem:[#allocation5 + $0x84] ss:$16 sps:$4 sm:$0xff]  }
 0x477   :  { %1180 = vmatmul.mubr.bf16.vlgmr.msra.gmra.mrb[32].mxu0 %v1146_v14  ;;  %1221 = vmatmul.mubr.bf16.vlgmr.msra.gmra.mrb[32].mxu1 %v1146_v14  ;;  %v2719_v14 = vld [vmem:[#allocation5 + $0x8c] ss:$16 sps:$4 sm:$0xff]  }
 0x478   :  { %1266 = vmatpush1.bf16.msra.mxu0 %v2265_v36  ;;  %1307 = vmatpush1.bf16.msra.mxu1 %v2267_v37  ;;  %v2658_v36 = vld [vmem:[#allocation5 + $0x4] ss:$16 sps:$4 sm:$0xff]   ;;  %v2661_v37 = vld [vmem:[#allocation5 + $0xc] ss:$16 sps:$4 sm:$0xff]  }
 0x479   :  { %1267 = vmatprep.subr.bf16.mxu0 %v2271_v38  ;;  %1308 = vmatprep.subr.bf16.mxu1 %v2273_v39 }
 0x47a   :  { %1297 = vmatprep.mubr.bf16.mxu0 %v2849_v29  ;;  %1338 = vmatprep.mubr.bf16.mxu1 %v2849_v29 }
 0x47c   :  { %1268 = vmatpush1.bf16.msra.mxu0 %v2275_v40  ;;  %1309 = vmatpush1.bf16.msra.mxu1 %v2279_v41  ;;  %v2855_v40 = vld [vmem:[#allocation14_spill] sm:$0xff] }
 0x47d   :  { %1269 = vmatprep.subr.bf16.mxu0 %v2283_v42  ;;  %1310 = vmatprep.subr.bf16.mxu1 %v2285_v43  ;;  %v2856_v42 = vld [vmem:[#allocation15_spill] sm:$0xff] }
 0x480   :  { %1270 = vmatpush1.bf16.msra.mxu0 %v2292_v45  ;;  %1311 = vmatpush1.bf16.msra.mxu1 %v2294_v46 }
 0x481   :  { %1271 = vmatprep.subr.bf16.mxu0 %v2298_v47  ;;  %1312 = vmatprep.subr.bf16.mxu1 %v2302_v48  ;;  %v2857_v47 = vld [vmem:[#allocation16_spill] sm:$0xff] }
 0x484   :  { %1272 = vmatpush1.bf16.msra.mxu0 %v2304_v49  ;;  %1313 = vmatpush1.bf16.msra.mxu1 %v2306_v50  ;;  %v2858_v49 = vld [vmem:[#allocation17_spill] sm:$0xff] }
 0x485   :  { %1273 = vmatprep.subr.bf16.mxu0 %v2310_v51  ;;  %1314 = vmatprep.subr.bf16.mxu1 %v2314_v52 }
 0x488   :  { %1274 = vmatpush1.bf16.msra.mxu0 %v2321_v54  ;;  %1315 = vmatpush1.bf16.msra.mxu1 %v2323_v55 }
 0x489   :  { %1275 = vmatprep.subr.bf16.mxu0 %v2325_v56  ;;  %1316 = vmatprep.subr.bf16.mxu1 %v2327_v57 }
 0x48c   :  { %1276 = vmatpush1.bf16.msra.mxu0 %v2335_v58  ;;  %1317 = vmatpush1.bf16.msra.mxu1 %v2337_v59 }
 0x48d   :  { %1277 = vmatprep.subr.bf16.mxu0 %v2341_v60  ;;  %1318 = vmatprep.subr.bf16.mxu1 %v2343_v61 }
 0x490   :  { %1278 = vmatpush1.bf16.msra.mxu0 %v2352_v63  ;;  %1319 = vmatpush1.bf16.msra.mxu1 %v2354_v1 }
 0x491   :  { %1279 = vmatprep.subr.bf16.mxu0 %v2358_v2  ;;  %1320 = vmatprep.subr.bf16.mxu1 %v2360_v3 }
 0x494   :  { %1280 = vmatpush1.bf16.msra.mxu0 %v2364_v4  ;;  %1321 = vmatpush1.bf16.msra.mxu1 %v2366_v5 }
 0x495   :  { %1383 = vmatprep.subr.bf16.mxu0 %v2658_v36  ;;  %1424 = vmatprep.subr.bf16.mxu1 %v2661_v37 }
 0x54a   :  { %v1181_v38 = vpop.f32.mrb[32].mxu0  ;;  %v1222_v39 = vpop.f32.mrb[32].mxu1 }
 0x54b   :  { %v1229_v41 = vadd.f32 %v1181_v38, %v2855_v40  ;;  %v1231_v43 = vadd.f32 %v1222_v39, %v2856_v42  ;;  %v1183_v45 = vpop.f32.mrb[33].mxu0  ;;  %v1224_v46 = vpop.f32.mrb[33].mxu1  ;;  %v2722_v38 = vld [vmem:[#allocation5 + $0x80] ss:$16 sps:$4 sm:$0xff]   ;;  %v2725_v39 = vld [vmem:[#allocation5 + $0x88] ss:$16 sps:$4 sm:$0xff]  }
 0x54c   :  { %v1230_v48 = vadd.f32 %v1183_v45, %v2857_v47  ;;  %v1232_v50 = vadd.f32 %v1224_v46, %v2858_v49  ;;  %v1185_v51 = vpop.f32.mrb[34].mxu0  ;;  %v1226_v52 = vpop.f32.mrb[34].mxu1  ;;  %v2728_v40 = vld [vmem:[#allocation5 + $0xa4] ss:$16 sps:$4 sm:$0xff]   ;;  %v2861_v45 = vld [vmem:[#allocation20_spill] sm:$0xff] }
 0x54d   :  { %v1817_v54 = vmul.f32 -1.442695, %v1229_v41  ;;  %v1186_v55 = vpop.f32.mrb[35].mxu0  ;;  %v1227_v56 = vpop.f32.mrb[35].mxu1  ;;  %v1819_v62 = vmul.f32 -1.442695, %v1231_v43 }
 0x54e   :  { %v1818_v57 = vmul.f32 -1.442695, %v1230_v48  ;;  %v2731_v41 = vld [vmem:[#allocation5 + $0xac] ss:$16 sps:$4 sm:$0xff]   ;;  %v2860_v42 = vld [vmem:[#allocation19_spill] sm:$0xff]  ;;  %v2862_v46 = vld [vmem:[#allocation21_spill] sm:$0xff] }
 0x54f   :  { %2046 = vpow2.f32 %v1817_v54 }
 0x550   :  { %2048 = vpow2.f32 %v1818_v57 }
 0x551   :  { %2050 = vtanh.f32 %v1232_v50 }
 0x552   :  { %2052 = vpow2.f32 %v1819_v62 }
 0x559   :  { %v2047_v13 = vpop.eup %2046 }
 0x55a   :  { %v1242_v15 = vadd.f32 1.0, %v2047_v13  ;;  %v2049_v17 = vpop.eup %2048 }
 0x55b   :  { %v1243_v16 = vadd.f32 1.0, %v2049_v17  ;;  %v2051_v0 = vpop.eup %2050 }
 0x55c   :  { %2054 = vrcp.f32 %v1242_v15  ;;  %v2053_v18 = vpop.eup %2052 }
 0x55d   :  { %2056 = vrcp.f32 %v1243_v16  ;;  %v1244_v8 = vadd.f32 1.0, %v2053_v18 }
 0x55f   :  { %2058 = vrcp.f32 %v1244_v8  ;;  %v2134_v8 = vld [vmem:[#allocation5 + $0xc4] ss:$16 sps:$4 sm:$0xff]  }
 0x566   :  { %v2055_v19 = vpop.eup %2054 }
 0x567   :  { %v1253_v20 = vmul.f32 %v2055_v19, %v2051_v0  ;;  %v2057_v26 = vpop.eup %2056 }
 0x568   :  { %v1252_v23 = vmul.f32 %v2057_v26, %v2623_v6  ;;  %v2707_v6 = vld [vmem:[#allocation5 + $0x6c] ss:$16 sps:$4 sm:$0xff]   ;;  %v2133_v26 = vld [vmem:[#allocation5 + $0xa8] ss:$16 sps:$4 sm:$0xff]  }
 0x569   :  { %v2059_v27 = vpop.eup %2058 }
 0x56a   :  { %v2669_v25 = vadd.f32 %v1253_v20, %v1252_v23  ;;  %v2135_v23 = vld [vmem:[#allocation5 + $0xcc] ss:$16 sps:$4 sm:$0xff]  }
 0x56c   :  { %2060 = vtanh.f32 %v2669_v25 }
 0x576   :  { %v2061_v44 = vpop.eup %2060 }
 0x577   :  { %v1256_v33 = vmul.f32 %v2061_v44, %v2059_v27  ;;  %v2137_v27 = vld [vmem:[#allocation5 + $0xc8] ss:$16 sps:$4 sm:$0xff]   ;;  %v2138_v44 = vld [vmem:[#allocation5 + $0xe4] ss:$16 sps:$4 sm:$0xff]  }
 0x579   :  { %v1264_v34 = vpack.c.bf16 %v1256_v33, %v1256_v33  ;;  %v2139_v33 = vld [vmem:[#allocation5 + $0xec] ss:$16 sps:$4 sm:$0xff]  }
 0x57b   :  { %1298 = vmatmul.mubr.bf16.vlgmr.msra.gmra.mrb[36].mxu0 %v1264_v34  ;;  %1339 = vmatmul.mubr.bf16.vlgmr.msra.gmra.mrb[36].mxu1 %v1264_v34  ;;  %v2140_v34 = vld [vmem:[#allocation5 + $0xe0] ss:$16 sps:$4 sm:$0xff]  }
 0x57c   :  { %1384 = vmatpush1.bf16.msra.mxu0 %v2672_v31  ;;  %1425 = vmatpush1.bf16.msra.mxu1 %v2675_v35 }
 0x57d   :  { %1385 = vmatprep.subr.bf16.mxu0 %v2678_v53  ;;  %1426 = vmatprep.subr.bf16.mxu1 %v2681_v28 }
 0x57e   :  { %1415 = vmatprep.mubr.bf16.mxu0 %v2849_v29  ;;  %1456 = vmatprep.mubr.bf16.mxu1 %v2849_v29 }
 0x580   :  { %1386 = vmatpush1.bf16.msra.mxu0 %v2686_v24  ;;  %1427 = vmatpush1.bf16.msra.mxu1 %v2689_v10 }
 0x581   :  { %1387 = vmatprep.subr.bf16.mxu0 %v2692_v21  ;;  %1428 = vmatprep.subr.bf16.mxu1 %v2695_v32 }
 0x584   :  { %1388 = vmatpush1.bf16.msra.mxu0 %v2698_v12  ;;  %1429 = vmatpush1.bf16.msra.mxu1 %v2701_v7 }
 0x585   :  { %1389 = vmatprep.subr.bf16.mxu0 %v2704_v11  ;;  %1430 = vmatprep.subr.bf16.mxu1 %v2707_v6 }
 0x588   :  { %1390 = vmatpush1.bf16.msra.mxu0 %v2710_v22  ;;  %1431 = vmatpush1.bf16.msra.mxu1 %v2713_v9 }
 0x589   :  { %1391 = vmatprep.subr.bf16.mxu0 %v2716_v30  ;;  %1432 = vmatprep.subr.bf16.mxu1 %v2719_v14 }
 0x58c   :  { %1392 = vmatpush1.bf16.msra.mxu0 %v2722_v38  ;;  %1433 = vmatpush1.bf16.msra.mxu1 %v2725_v39 }
 0x58d   :  { %1393 = vmatprep.subr.bf16.mxu0 %v2728_v40  ;;  %1434 = vmatprep.subr.bf16.mxu1 %v2731_v41 }
 0x590   :  { %1394 = vmatpush1.bf16.msra.mxu0 %v2335_v58  ;;  %1435 = vmatpush1.bf16.msra.mxu1 %v2337_v59 }
 0x591   :  { %1395 = vmatprep.subr.bf16.mxu0 %v2341_v60  ;;  %1436 = vmatprep.subr.bf16.mxu1 %v2343_v61  ;;  %v2859_v60 = vld [vmem:[#allocation18_spill] sm:$0xff] }
 0x594   :  { %1396 = vmatpush1.bf16.msra.mxu0 %v2352_v63  ;;  %1437 = vmatpush1.bf16.msra.mxu1 %v2354_v1 }
 0x595   :  { %1397 = vmatprep.subr.bf16.mxu0 %v2358_v2  ;;  %1438 = vmatprep.subr.bf16.mxu1 %v2360_v3 }
 0x598   :  { %1398 = vmatpush1.bf16.msra.mxu0 %v2364_v4  ;;  %1439 = vmatpush1.bf16.msra.mxu1 %v2366_v5 }
 0x599   :  { %1501 = vmatprep.subr.bf16.mxu0 %v2658_v36  ;;  %1542 = vmatprep.subr.bf16.mxu1 %v2661_v37 }
 0x64e   :  { %v1299_v58 = vpop.f32.mrb[36].mxu0  ;;  %v1340_v59 = vpop.f32.mrb[36].mxu1 }
 0x64f   :  { %v1347_v61 = vadd.f32 %v1299_v58, %v2859_v60  ;;  %v1349_v63 = vadd.f32 %v1340_v59, %v2860_v42  ;;  %v1301_v43 = vpop.f32.mrb[37].mxu0  ;;  %v1342_v1 = vpop.f32.mrb[37].mxu1 }
 0x650   :  { %v1348_v2 = vadd.f32 %v1301_v43, %v2861_v45  ;;  %v1350_v3 = vadd.f32 %v1342_v1, %v2862_v46  ;;  %v1303_v47 = vpop.f32.mrb[38].mxu0  ;;  %v1344_v4 = vpop.f32.mrb[38].mxu1 }
 0x651   :  { %v1820_v48 = vmul.f32 -1.442695, %v1347_v61  ;;  %v1304_v5 = vpop.f32.mrb[39].mxu0  ;;  %v1345_v49 = vpop.f32.mrb[39].mxu1  ;;  %v1822_v37 = vmul.f32 -1.442695, %v1349_v63 }
 0x652   :  { %v1821_v36 = vmul.f32 -1.442695, %v1348_v2  ;;  %v1974_v49 = vld [vmem:[%s2823_s4] sm:$0xff]  }
 0x653   :  { %2062 = vpow2.f32 %v1820_v48 }
 0x654   :  { %2064 = vpow2.f32 %v1821_v36  ;;  %v2195_v36 = vmov 0.0  }
 0x655   :  { %2066 = vtanh.f32 %v1350_v3 }
 0x656   :  { %2068 = vpow2.f32 %v1822_v37  ;;  %v1975_v37 = vld [vmem:[%s2823_s4 + $0x8] sm:$0xff]  }
 0x65d   :  { %v2063_v50 = vpop.eup %2062 }
 0x65e   :  { %v1360_v51 = vadd.f32 1.0, %v2063_v50  ;;  %v2065_v52 = vpop.eup %2064  ;;  %v1976_v50 = vld [vmem:[%s2823_s4 + $0x10] sm:$0xff]  }
 0x65f   :  { %v1361_v54 = vadd.f32 1.0, %v2065_v52  ;;  %v2067_v55 = vpop.eup %2066  ;;  %v1978_v52 = vld [vmem:[%s2823_s4 + $0x20] sm:$0xff]  }
 0x660   :  { %2070 = vrcp.f32 %v1360_v51  ;;  %v2069_v56 = vpop.eup %2068  ;;  %v1977_v51 = vld [vmem:[%s2823_s4 + $0x18] sm:$0xff]  }
 0x661   :  { %2072 = vrcp.f32 %v1361_v54  ;;  %v1362_v15 = vadd.f32 1.0, %v2069_v56  ;;  %v1979_v54 = vld [vmem:[%s2823_s4 + $0x28] sm:$0xff]   ;;  %v1981_v56 = vld [vmem:[%s2823_s4 + $0x38] sm:$0xff]  }
 0x663   :  { %2074 = vrcp.f32 %v1362_v15 }
 0x66a   :  { %v2071_v57 = vpop.eup %2070 }
 0x66b   :  { %v1371_v62 = vmul.f32 %v2071_v57, %v2067_v55  ;;  %v2073_v13 = vpop.eup %2072  ;;  %v1980_v55 = vld [vmem:[%s2823_s4 + $0x30] sm:$0xff]  }
 0x66c   :  { %v1370_v17 = vmul.f32 %v2073_v13, %v2669_v25  ;;  %v2136_v25 = vld [vmem:[#allocation5 + $0xc0] ss:$16 sps:$4 sm:$0xff]   ;;  %v2867_v13 = vld [vmem:[#allocation26_spill] sm:$0xff] }
 0x66d   :  { %v2075_v0 = vpop.eup %2074 }
 0x66e   :  { %v2751_v16 = vadd.f32 %v1371_v62, %v1370_v17  ;;  %v2868_v17 = vld [vmem:[#allocation27_spill] sm:$0xff] }
 0x670   :  { %2076 = vtanh.f32 %v2751_v16 }
 0x67a   :  { %v2077_v18 = vpop.eup %2076 }
 0x67b   :  { %v1374_v19 = vmul.f32 %v2077_v18, %v2075_v0 }
 0x67d   :  { %v1382_v20 = vpack.c.bf16 %v1374_v19, %v1374_v19  ;;  %v2869_v19 = vld [vmem:[#allocation28_spill] sm:$0xff] }
 0x67f   :  { %1416 = vmatmul.mubr.bf16.vlgmr.msra.gmra.mrb[40].mxu0 %v1382_v20  ;;  %1457 = vmatmul.mubr.bf16.vlgmr.msra.gmra.mrb[40].mxu1 %v1382_v20 }
 0x680   :  { %1502 = vmatpush1.bf16.msra.mxu0 %v2672_v31  ;;  %1543 = vmatpush1.bf16.msra.mxu1 %v2675_v35  ;;  %v2141_v31 = vld [vmem:[#allocation5 + $0xe8] ss:$16 sps:$4 sm:$0xff]  }
 0x681   :  { %1503 = vmatprep.subr.bf16.mxu0 %v2678_v53  ;;  %1544 = vmatprep.subr.bf16.mxu1 %v2681_v28  ;;  %v2863_v28 = vld [vmem:[#allocation22_spill] sm:$0xff] }
 0x682   :  { %1533 = vmatprep.mubr.bf16.mxu0 %v2849_v29  ;;  %1574 = vmatprep.mubr.bf16.mxu1 %v2849_v29  ;;  %v2132_v29 = vld [vmem:[#allocation5 + $0xa0] ss:$16 sps:$4 sm:$0xff]  }
 0x684   :  { %1504 = vmatpush1.bf16.msra.mxu0 %v2686_v24  ;;  %1545 = vmatpush1.bf16.msra.mxu1 %v2689_v10  ;;  %v2864_v10 = vld [vmem:[#allocation23_spill] sm:$0xff] }
 0x685   :  { %1505 = vmatprep.subr.bf16.mxu0 %v2692_v21  ;;  %1546 = vmatprep.subr.bf16.mxu1 %v2695_v32 }
 0x688   :  { %1506 = vmatpush1.bf16.msra.mxu0 %v2698_v12  ;;  %1547 = vmatpush1.bf16.msra.mxu1 %v2701_v7  ;;  %v2865_v7 = vld [vmem:[#allocation24_spill] sm:$0xff] }
 0x689   :  { %1507 = vmatprep.subr.bf16.mxu0 %v2704_v11  ;;  %1548 = vmatprep.subr.bf16.mxu1 %v2707_v6  ;;  %v2866_v6 = vld [vmem:[#allocation25_spill] sm:$0xff] }
 0x68c   :  { %1508 = vmatpush1.bf16.msra.mxu0 %v2710_v22  ;;  %1549 = vmatpush1.bf16.msra.mxu1 %v2713_v9 }
 0x68d   :  { %1509 = vmatprep.subr.bf16.mxu0 %v2716_v30  ;;  %1550 = vmatprep.subr.bf16.mxu1 %v2719_v14 }
 0x690   :  { %1510 = vmatpush1.bf16.msra.mxu0 %v2722_v38  ;;  %1551 = vmatpush1.bf16.msra.mxu1 %v2725_v39 }
 0x691   :  { %1511 = vmatprep.subr.bf16.mxu0 %v2728_v40  ;;  %1552 = vmatprep.subr.bf16.mxu1 %v2731_v41 }
 0x694   :  { %1512 = vmatpush1.bf16.msra.mxu0 %v2132_v29  ;;  %1553 = vmatpush1.bf16.msra.mxu1 %v2133_v26  ;;  %v2870_v29 = vld [vmem:[#allocation29_spill] sm:$0xff] }
 0x695   :  { %1513 = vmatprep.subr.bf16.mxu0 %v2134_v8  ;;  %1554 = vmatprep.subr.bf16.mxu1 %v2135_v23 }
 0x698   :  { %1514 = vmatpush1.bf16.msra.mxu0 %v2136_v25  ;;  %1555 = vmatpush1.bf16.msra.mxu1 %v2137_v27 }
 0x699   :  { %1515 = vmatprep.subr.bf16.mxu0 %v2138_v44  ;;  %1556 = vmatprep.subr.bf16.mxu1 %v2139_v33 }
 0x69c   :  { %1516 = vmatpush1.bf16.msra.mxu0 %v2140_v34  ;;  %1557 = vmatpush1.bf16.msra.mxu1 %v2141_v31 }
 0x69d   :  { %1847 = vmatprep.subr.bf16.mxu0 %v2195_v36 }
 0x752   :  { %v1417_v35 = vpop.f32.mrb[40].mxu0  ;;  %v1458_v53 = vpop.f32.mrb[40].mxu1 }
 0x753   :  { %v1465_v24 = vadd.f32 %v1417_v35, %v2863_v28  ;;  %v1467_v21 = vadd.f32 %v1458_v53, %v2864_v10  ;;  %v1419_v32 = vpop.f32.mrb[41].mxu0  ;;  %v1460_v12 = vpop.f32.mrb[41].mxu1 }
 0x754   :  { %v1466_v11 = vadd.f32 %v1419_v32, %v2865_v7  ;;  %v1468_v22 = vadd.f32 %v1460_v12, %v2866_v6  ;;  %v1421_v9 = vpop.f32.mrb[42].mxu0  ;;  %v1462_v30 = vpop.f32.mrb[42].mxu1 }
 0x755   :  { %v1823_v14 = vmul.f32 -1.442695, %v1465_v24  ;;  %v1422_v38 = vpop.f32.mrb[43].mxu0  ;;  %v1463_v39 = vpop.f32.mrb[43].mxu1  ;;  %v1825_v41 = vmul.f32 -1.442695, %v1467_v21 }
 0x756   :  { %v1824_v40 = vmul.f32 -1.442695, %v1466_v11  ;;  %v1829_v38 = vld [vmem:[%s2824_s5] ss:$0 sm:$0xff] }
 0x757   :  { %2078 = vpow2.f32 %v1823_v14 }
 0x758   :  { %2080 = vpow2.f32 %v1824_v40 }
 0x759   :  { %2082 = vtanh.f32 %v1468_v22 }
 0x75a   :  { %2084 = vpow2.f32 %v1825_v41 }
 0x761   :  { %v2079_v58 = vpop.eup %2078 }
 0x762   :  { %v1478_v59 = vadd.f32 1.0, %v2079_v58  ;;  %v2081_v60 = vpop.eup %2080 }
 0x763   :  { %v1479_v61 = vadd.f32 1.0, %v2081_v60  ;;  %v2083_v42 = vpop.eup %2082 }
 0x764   :  { %2086 = vrcp.f32 %v1478_v59  ;;  %v2085_v63 = vpop.eup %2084 }
 0x765   :  { %2088 = vrcp.f32 %v1479_v61  ;;  %v1480_v2 = vadd.f32 1.0, %v2085_v63 }
 0x767   :  { %2090 = vrcp.f32 %v1480_v2 }
 0x76e   :  { %v2087_v43 = vpop.eup %2086 }
 0x76f   :  { %v1489_v1 = vmul.f32 %v2087_v43, %v2083_v42  ;;  %v2089_v45 = vpop.eup %2088 }
 0x770   :  { %v1488_v46 = vmul.f32 %v2089_v45, %v2751_v16 }
 0x771   :  { %v2091_v47 = vpop.eup %2090 }
 0x772   :  { %v2781_v3 = vadd.f32 %v1489_v1, %v1488_v46 }
 0x774   :  { %2092 = vtanh.f32 %v2781_v3 }
 0x77e   :  { %v2093_v4 = vpop.eup %2092 }
 0x77f   :  { %v1492_v48 = vmul.f32 %v2093_v4, %v2091_v47 }
 0x781   :  { %v1500_v5 = vpack.c.bf16 %v1492_v48, %v1492_v48 }
 0x783   :  { %1534 = vmatmul.mubr.bf16.vlgmr.msra.gmra.mrb[44].mxu0 %v1500_v5  ;;  %1575 = vmatmul.mubr.bf16.vlgmr.msra.gmra.mrb[44].mxu1 %v1500_v5 }
 0x784   :  { %1848 = vmatpush3.bf16.msra.mxu0 %v1974_v49  ;;  %1863 = vmatprep.mubr.msk.bf16.mxu0 %vm2196_vm0, %v2195_v36 }
 0x785   :  { %1849 = vmatprep.subr.bf16.mxu0 %v2195_v36 }
 0x788   :  { %1850 = vmatpush3.bf16.msra.mxu0 %v1975_v37 }
 0x789   :  { %1851 = vmatprep.subr.bf16.mxu0 %v2195_v36 }
 0x78c   :  { %1852 = vmatpush3.bf16.msra.mxu0 %v1976_v50 }
 0x78d   :  { %1853 = vmatprep.subr.bf16.mxu0 %v2195_v36 }
 0x790   :  { %1854 = vmatpush3.bf16.msra.mxu0 %v1977_v51 }
 0x791   :  { %1855 = vmatprep.subr.bf16.mxu0 %v2195_v36 }
 0x794   :  { %1856 = vmatpush3.bf16.msra.mxu0 %v1978_v52 }
 0x795   :  { %1857 = vmatprep.subr.bf16.mxu0 %v2195_v36 }
 0x798   :  { %1858 = vmatpush3.bf16.msra.mxu0 %v1979_v54 }
 0x799   :  { %1859 = vmatprep.subr.bf16.mxu0 %v2195_v36 }
 0x79c   :  { %1860 = vmatpush3.bf16.msra.mxu0 %v1980_v55 }
 0x79d   :  { %1861 = vmatprep.subr.bf16.mxu0 %v2195_v36 }
 0x7a0   :  { %1862 = vmatpush3.bf16.msra.mxu0 %v1981_v56 }
 0x856   :  { %v1535_v57 = vpop.f32.mrb[44].mxu0  ;;  %v1576_v62 = vpop.f32.mrb[44].mxu1 }
 0x857   :  { %v1583_v15 = vadd.f32 %v1535_v57, %v2867_v13  ;;  %v1585_v16 = vadd.f32 %v1576_v62, %v2868_v17  ;;  %v1537_v0 = vpop.f32.mrb[45].mxu0  ;;  %v1578_v18 = vpop.f32.mrb[45].mxu1 }
 0x858   :  { %v1584_v20 = vadd.f32 %v1537_v0, %v2869_v19  ;;  %v1586_v26 = vadd.f32 %v1578_v18, %v2870_v29  ;;  %v1539_v8 = vpop.f32.mrb[46].mxu0  ;;  %v1580_v23 = vpop.f32.mrb[46].mxu1 }
 0x859   :  { %v1826_v25 = vmul.f32 -1.442695, %v1583_v15  ;;  %v1540_v27 = vpop.f32.mrb[47].mxu0  ;;  %v1581_v44 = vpop.f32.mrb[47].mxu1  ;;  %v1828_v34 = vmul.f32 -1.442695, %v1585_v16 }
 0x85a   :  { %v1827_v33 = vmul.f32 -1.442695, %v1584_v20 }
 0x85b   :  { %2094 = vpow2.f32 %v1826_v25 }
 0x85c   :  { %2096 = vpow2.f32 %v1827_v33 }
 0x85d   :  { %2098 = vtanh.f32 %v1586_v26 }
 0x85e   :  { %2100 = vpow2.f32 %v1828_v34 }
 0x865   :  { %v2095_v31 = vpop.eup %2094 }
 0x866   :  { %v1596_v35 = vadd.f32 1.0, %v2095_v31  ;;  %v2097_v53 = vpop.eup %2096 }
 0x867   :  { %v1597_v28 = vadd.f32 1.0, %v2097_v53  ;;  %v2099_v24 = vpop.eup %2098 }
 0x868   :  { %2102 = vrcp.f32 %v1596_v35  ;;  %v2101_v10 = vpop.eup %2100 }
 0x869   :  { %2104 = vrcp.f32 %v1597_v28  ;;  %v1598_v7 = vadd.f32 1.0, %v2101_v10 }
 0x86b   :  { %2106 = vrcp.f32 %v1598_v7 }
 0x872   :  { %v2103_v21 = vpop.eup %2102 }
 0x873   :  { %v1607_v32 = vmul.f32 %v2103_v21, %v2099_v24  ;;  %v2105_v12 = vpop.eup %2104 }
 0x874   :  { %v1606_v11 = vmul.f32 %v2105_v12, %v2781_v3 }
 0x875   :  { %v2107_v22 = vpop.eup %2106 }
 0x876   :  { %v1608_v6 = vadd.f32 %v1607_v32, %v1606_v11 }
 0x878   :  { %2108 = vtanh.f32 %v1608_v6 }
 0x882   :  { %v2109_v9 = vpop.eup %2108 }
 0x883   :  { %v1610_v30 = vmul.f32 %v2109_v9, %v2107_v22 }
 0x885   :  { %v1611_v14 = vpack.c.bf16 %v1610_v30, %v1610_v30 }
 0x887   :  { %1864 = vmatmul.mubr.bf16.vlgmr.msra.gmra.mrb[48].mxu0 %v1611_v14 }
 0x95a   :  { %v1717_v39 = vpop.f32.mrb[48].mxu0 }
 0x95b   :  { %v1718_v40 = vadd.f32 %v1829_v38, %v1717_v39  ;;  %v1865_v41 = vpop.f32.mrb[49].mxu0 }
 0x95c   :  { %v1720_v58 = vpop.f32.mrb[50].mxu0 }
 0x95d   :  { %1723 = vst [vmem:[%s2825_s6] sm:$0xff] %v1718_v40  ;;  %v1866_v59 = vpop.f32.mrb[51].mxu0 }
 0x95e   :  { %1728 = vsyncpa [#allocation4], 1 }
 0x95f   :  { %1729 = vsyncpa [#allocation6], 1 }

</bundles_post_ra>
